<compile_context>
chip_gen: v7x
topology: tpu7x:2x2x1
jax: 0.10.0
libtpu: 0.0.40
codegen_flags: <defaults>
</compile_context>

<pallas_src>
import functools

import jax
import jax.numpy as jnp
from jax import lax
from jax.experimental import pallas as pl
from jax.experimental.pallas import tpu as pltpu


def _mish(x):
    """mish(x) = x * tanh(softplus(x)) = x * u*(u+2) / (u*(u+2) + 2), u = exp(x).

    Clamping x at 20 keeps exp finite (exp(20)^2 ~ 2.4e17, no f32 overflow) and
    for x > 20 the tanh factor is already 1.0 in f32, so results are unchanged.
    The u*(u+2) form avoids the (s^2 - 1) cancellation for large-negative x.
    """
    u = jnp.exp(jnp.minimum(x, 20.0))
    num = u * (u + 2.0)
    return x * num * pl.reciprocal(num + 2.0, approx=True)


def mediator_kernel(second_ref, first_ref, w1_ref, b1_ref, w2_ref, b2_ref,
                    out_ref, *, sub_rows):
    """Process one (1, C, R_BLK, 128) spatial block.

    diff = first - second; h = Mish(diff @ W1 + b1); y = Mish(h @ W2 + b2).
    Channels (C=4, 2C=8) are unrolled at trace time; spatial rows are walked in
    sub-chunks of `sub_rows` (8,128)-dense vreg tiles so the live set stays in
    registers. The tiny contractions are unrolled VPU multiply-adds with scalar
    weights read from SMEM (no MXU for a 4x8 matmul).
    """
    c_in = w1_ref.shape[0]
    d_hidn = w1_ref.shape[1]
    r_blk = second_ref.shape[2]

    # Hoist every SMEM scalar read above the spatial loop (once per grid step).
    w1 = [[w1_ref[c, j] for j in range(d_hidn)] for c in range(c_in)]
    b1 = [b1_ref[j] for j in range(d_hidn)]
    w2 = [[w2_ref[j, k] for k in range(c_in)] for j in range(d_hidn)]
    b2 = [b2_ref[k] for k in range(c_in)]

    def body(i, carry):
        r0 = pl.multiple_of(i * sub_rows, sub_rows)
        rows = pl.ds(r0, sub_rows)

        # diff per input channel: C dense (sub_rows, 128) tiles.
        diff = [first_ref[0, c, rows, :] - second_ref[0, c, rows, :]
                for c in range(c_in)]

        # Layer 1: C -> 2C, fused Mish.  ~d_hidn vregs live (sub_rows=8/16).
        hidden = []
        for j in range(d_hidn):
            acc = diff[0] * w1[0][j]
            for c in range(1, c_in):
                acc = acc + diff[c] * w1[c][j]
            hidden.append(_mish(acc + b1[j]))

        # Layer 2: 2C -> C, fused Mish, dense (sub_rows, 128) stores.
        for k in range(c_in):
            acc = hidden[0] * w2[0][k]
            for j in range(1, d_hidn):
                acc = acc + hidden[j] * w2[j][k]
            y = _mish(acc + b2[k])
            out_ref[0, k, rows, :] = y.astype(out_ref.dtype)
        return carry

    lax.fori_loop(0, r_blk // sub_rows, body, 0)


def _pick_row_tile(r_total, channels, itemsize, target_block_bytes, n_batch):
    """Largest multiple-of-8 row tile dividing r_total whose (1, C, tile, 128)
    block stays under target_block_bytes; if batch == 1 and splitting is
    possible, cap it so the spatial grid axis has >= 2 steps (v7x megacore)."""
    bytes_per_row = channels * 128 * itemsize
    max_rows = max(8, (target_block_bytes // bytes_per_row) // 8 * 8)
    r_blk = min(r_total, max_rows)
    while r_blk % 8 != 0 or r_total % r_blk != 0:
        r_blk -= 8
    if n_batch == 1 and r_blk == r_total and r_total >= 16:
        half = (r_total // 2) // 8 * 8
        while half >= 8 and r_total % half != 0:
            half -= 8
        if half >= 8:
            r_blk = half
    return r_blk


@functools.partial(jax.jit, static_argnames=("target_block_bytes",))
def mediator_forward(second, first, w1, b1, w2, b2, *, target_block_bytes=1 << 20):
    """second, first: NCHW float32; w1: (C, 2C), b1: (2C,), w2: (2C, C), b2: (C,).

    (PyTorch Conv2d 1x1 weights of shape (out, in, 1, 1) correspond to
    weight[:, :, 0, 0].T here.)  Returns NCHW float32.
    """
    N, C, H, W = second.shape
    S = H * W

    # Pad the flattened spatial axis to a multiple of 8*128 so every block is
    # (8,128)-dense; the padded region (zeros) is computed and sliced off.
    s_pad = -(-S // 1024) * 1024
    r_total = s_pad // 128

    s3 = second.reshape(N, C, S)
    f3 = first.reshape(N, C, S)
    if s_pad != S:
        pad = ((0, 0), (0, 0), (0, s_pad - S))
        s3 = jnp.pad(s3, pad)
        f3 = jnp.pad(f3, pad)
    s4 = s3.reshape(N, C, r_total, 128)
    f4 = f3.reshape(N, C, r_total, 128)

    itemsize = jnp.dtype(second.dtype).itemsize
    r_blk = _pick_row_tile(r_total, C, itemsize, target_block_bytes, N)
    sub_rows = 16 if r_blk % 16 == 0 else 8
    grid = (N, r_total // r_blk)

    data_spec = pl.BlockSpec((1, C, r_blk, 128), lambda n, s: (n, 0, s, 0))
    smem_spec = pl.BlockSpec(memory_space=pltpu.MemorySpace.SMEM)

    out4 = pl.pallas_call(
        functools.partial(mediator_kernel, sub_rows=sub_rows),
        out_shape=jax.ShapeDtypeStruct((N, C, r_total, 128), jnp.float32),
        grid=grid,
        in_specs=[
            data_spec,   # second  (tiled, VMEM)
            data_spec,   # first   (tiled, VMEM)
            smem_spec,   # W1 scalars
            smem_spec,   # b1 scalars
            smem_spec,   # W2 scalars
            smem_spec,   # b2 scalars
        ],
        out_specs=pl.BlockSpec((1, C, r_blk, 128), lambda n, s: (n, 0, s, 0)),
        compiler_params=pltpu.CompilerParams(
            dimension_semantics=("parallel", "parallel"),
            vmem_limit_bytes=32 * 1024 * 1024,
        ),
    )(s4, f4, w1, b1, w2, b2)

    return out4.reshape(N, C, s_pad)[:, :, :S].reshape(N, C, H, W)


def mediator_reference(second, first, w1, b1, w2, b2):
    """Pure-JAX reference matching the PyTorch forward semantics (NCHW)."""
    def mish(x):
        return x * jnp.tanh(jax.nn.softplus(x))

    diff = first - second
    h = jnp.einsum("nchw,cd->ndhw", diff, w1) + b1[None, :, None, None]
    h = mish(h)
    y = jnp.einsum("ndhw,dc->nchw", h, w2) + b2[None, :, None, None]
    return mish(y)


if __name__ == "__main__":
    # Shapes consistent with the module: in_dim = C = 4, d_hidn = 2C = 8.
    N, C, H, W = 2, 4, 16, 16
    d_hidn = 2 * C

    key = jax.random.PRNGKey(0)
    k_s, k_f, k_w1, k_b1, k_w2, k_b2 = jax.random.split(key, 6)

    second = jax.random.normal(k_s, (N, C, H, W), dtype=jnp.float32)
    first = jax.random.normal(k_f, (N, C, H, W), dtype=jnp.float32)

    # Conv2d 1x1 weights stored in matmul form: (in, out).
    w1 = jax.random.normal(k_w1, (C, d_hidn), dtype=jnp.float32) * 0.1
    b1 = jax.random.normal(k_b1, (d_hidn,), dtype=jnp.float32) * 0.1
    w2 = jax.random.normal(k_w2, (d_hidn, C), dtype=jnp.float32) * 0.1
    b2 = jax.random.normal(k_b2, (C,), dtype=jnp.float32) * 0.1

    out = jax.block_until_ready(mediator_forward(second, first, w1, b1, w2, b2))
    ref = mediator_reference(second, first, w1, b1, w2, b2)
    assert out.shape == (N, C, H, W)
    # Tolerance covers the approx-reciprocal fused Mish vs exact softplus/tanh.
    assert jnp.allclose(out, ref, atol=5e-3, rtol=5e-3), "mismatch vs reference"

    # Exercise the multi-tile spatial path (small block budget -> grid (1, 4)).
    second2 = jax.random.normal(k_s, (1, C, 64, 64), dtype=jnp.float32)
    first2 = jax.random.normal(k_f, (1, C, 64, 64), dtype=jnp.float32)
    out2 = jax.block_until_ready(
        mediator_forward(second2, first2, w1, b1, w2, b2, target_block_bytes=4096)
    )
    ref2 = mediator_reference(second2, first2, w1, b1, w2, b2)
    assert jnp.allclose(out2, ref2, atol=5e-3, rtol=5e-3), "mismatch (tiled path)"

    # Exercise the non-128-divisible spatial path (padding + slice-off).
    second3 = jax.random.normal(k_s, (2, C, 7, 9), dtype=jnp.float32)
    first3 = jax.random.normal(k_f, (2, C, 7, 9), dtype=jnp.float32)
    out3 = jax.block_until_ready(mediator_forward(second3, first3, w1, b1, w2, b2))
    ref3 = mediator_reference(second3, first3, w1, b1, w2, b2)
    assert jnp.allclose(out3, ref3, atol=5e-3, rtol=5e-3), "mismatch (padded path)"

    print("KERNEL_OK")
</pallas_src>

<mosaic_0001>
module attributes {stable_mosaic.version = 11 : i64} {
  func.func @mediator_kernel(%arg0: i32, %arg1: i32, %arg2: memref<1x4x8x128xf32, #tpu.memory_space<vmem>>, %arg3: memref<1x4x8x128xf32, #tpu.memory_space<vmem>>, %arg4: memref<4x8xf32, #tpu.memory_space<smem>>, %arg5: memref<8xf32, #tpu.memory_space<smem>>, %arg6: memref<8x4xf32, #tpu.memory_space<smem>>, %arg7: memref<4xf32, #tpu.memory_space<smem>>, %arg8: memref<1x4x8x128xf32, #tpu.memory_space<vmem>>) attributes {dimension_semantics = [#tpu.dimension_semantics<parallel>, #tpu.dimension_semantics<parallel>], iteration_bounds = array<i64: 2, 1>, scalar_prefetch = 0 : i64, scratch_operands = 0 : i64, tpu.core_type = #tpu.core_type<tc>, window_params = [{transform_indices = @transform_0, window_bounds = array<i64: 1, 4, 8, 128>}, {transform_indices = @transform_1, window_bounds = array<i64: 1, 4, 8, 128>}, {transform_indices = @transform_2, window_bounds = array<i64: 4, 8>}, {transform_indices = @transform_3, window_bounds = array<i64: 8>}, {transform_indices = @transform_4, window_bounds = array<i64: 8, 4>}, {transform_indices = @transform_5, window_bounds = array<i64: 4>}, {transform_indices = @transform_6, window_bounds = array<i64: 1, 4, 8, 128>}]} {
    %c0 = arith.constant 0 : index
    %c0_0 = arith.constant 0 : index
    %0 = memref.load %arg4[%c0, %c0_0] : memref<4x8xf32, #tpu.memory_space<smem>>
    %c0_1 = arith.constant 0 : index
    %c1 = arith.constant 1 : index
    %1 = memref.load %arg4[%c0_1, %c1] : memref<4x8xf32, #tpu.memory_space<smem>>
    %c0_2 = arith.constant 0 : index
    %c2 = arith.constant 2 : index
    %2 = memref.load %arg4[%c0_2, %c2] : memref<4x8xf32, #tpu.memory_space<smem>>
    %c0_3 = arith.constant 0 : index
    %c3 = arith.constant 3 : index
    %3 = memref.load %arg4[%c0_3, %c3] : memref<4x8xf32, #tpu.memory_space<smem>>
    %c0_4 = arith.constant 0 : index
    %c4 = arith.constant 4 : index
    %4 = memref.load %arg4[%c0_4, %c4] : memref<4x8xf32, #tpu.memory_space<smem>>
    %c0_5 = arith.constant 0 : index
    %c5 = arith.constant 5 : index
    %5 = memref.load %arg4[%c0_5, %c5] : memref<4x8xf32, #tpu.memory_space<smem>>
    %c0_6 = arith.constant 0 : index
    %c6 = arith.constant 6 : index
    %6 = memref.load %arg4[%c0_6, %c6] : memref<4x8xf32, #tpu.memory_space<smem>>
    %c0_7 = arith.constant 0 : index
    %c7 = arith.constant 7 : index
    %7 = memref.load %arg4[%c0_7, %c7] : memref<4x8xf32, #tpu.memory_space<smem>>
    %c1_8 = arith.constant 1 : index
    %c0_9 = arith.constant 0 : index
    %8 = memref.load %arg4[%c1_8, %c0_9] : memref<4x8xf32, #tpu.memory_space<smem>>
    %c1_10 = arith.constant 1 : index
    %c1_11 = arith.constant 1 : index
    %9 = memref.load %arg4[%c1_10, %c1_11] : memref<4x8xf32, #tpu.memory_space<smem>>
    %c1_12 = arith.constant 1 : index
    %c2_13 = arith.constant 2 : index
    %10 = memref.load %arg4[%c1_12, %c2_13] : memref<4x8xf32, #tpu.memory_space<smem>>
    %c1_14 = arith.constant 1 : index
    %c3_15 = arith.constant 3 : index
    %11 = memref.load %arg4[%c1_14, %c3_15] : memref<4x8xf32, #tpu.memory_space<smem>>
    %c1_16 = arith.constant 1 : index
    %c4_17 = arith.constant 4 : index
    %12 = memref.load %arg4[%c1_16, %c4_17] : memref<4x8xf32, #tpu.memory_space<smem>>
    %c1_18 = arith.constant 1 : index
    %c5_19 = arith.constant 5 : index
    %13 = memref.load %arg4[%c1_18, %c5_19] : memref<4x8xf32, #tpu.memory_space<smem>>
    %c1_20 = arith.constant 1 : index
    %c6_21 = arith.constant 6 : index
    %14 = memref.load %arg4[%c1_20, %c6_21] : memref<4x8xf32, #tpu.memory_space<smem>>
    %c1_22 = arith.constant 1 : index
    %c7_23 = arith.constant 7 : index
    %15 = memref.load %arg4[%c1_22, %c7_23] : memref<4x8xf32, #tpu.memory_space<smem>>
    %c2_24 = arith.constant 2 : index
    %c0_25 = arith.constant 0 : index
    %16 = memref.load %arg4[%c2_24, %c0_25] : memref<4x8xf32, #tpu.memory_space<smem>>
    %c2_26 = arith.constant 2 : index
    %c1_27 = arith.constant 1 : index
    %17 = memref.load %arg4[%c2_26, %c1_27] : memref<4x8xf32, #tpu.memory_space<smem>>
    %c2_28 = arith.constant 2 : index
    %c2_29 = arith.constant 2 : index
    %18 = memref.load %arg4[%c2_28, %c2_29] : memref<4x8xf32, #tpu.memory_space<smem>>
    %c2_30 = arith.constant 2 : index
    %c3_31 = arith.constant 3 : index
    %19 = memref.load %arg4[%c2_30, %c3_31] : memref<4x8xf32, #tpu.memory_space<smem>>
    %c2_32 = arith.constant 2 : index
    %c4_33 = arith.constant 4 : index
    %20 = memref.load %arg4[%c2_32, %c4_33] : memref<4x8xf32, #tpu.memory_space<smem>>
    %c2_34 = arith.constant 2 : index
    %c5_35 = arith.constant 5 : index
    %21 = memref.load %arg4[%c2_34, %c5_35] : memref<4x8xf32, #tpu.memory_space<smem>>
    %c2_36 = arith.constant 2 : index
    %c6_37 = arith.constant 6 : index
    %22 = memref.load %arg4[%c2_36, %c6_37] : memref<4x8xf32, #tpu.memory_space<smem>>
    %c2_38 = arith.constant 2 : index
    %c7_39 = arith.constant 7 : index
    %23 = memref.load %arg4[%c2_38, %c7_39] : memref<4x8xf32, #tpu.memory_space<smem>>
    %c3_40 = arith.constant 3 : index
    %c0_41 = arith.constant 0 : index
    %24 = memref.load %arg4[%c3_40, %c0_41] : memref<4x8xf32, #tpu.memory_space<smem>>
    %c3_42 = arith.constant 3 : index
    %c1_43 = arith.constant 1 : index
    %25 = memref.load %arg4[%c3_42, %c1_43] : memref<4x8xf32, #tpu.memory_space<smem>>
    %c3_44 = arith.constant 3 : index
    %c2_45 = arith.constant 2 : index
    %26 = memref.load %arg4[%c3_44, %c2_45] : memref<4x8xf32, #tpu.memory_space<smem>>
    %c3_46 = arith.constant 3 : index
    %c3_47 = arith.constant 3 : index
    %27 = memref.load %arg4[%c3_46, %c3_47] : memref<4x8xf32, #tpu.memory_space<smem>>
    %c3_48 = arith.constant 3 : index
    %c4_49 = arith.constant 4 : index
    %28 = memref.load %arg4[%c3_48, %c4_49] : memref<4x8xf32, #tpu.memory_space<smem>>
    %c3_50 = arith.constant 3 : index
    %c5_51 = arith.constant 5 : index
    %29 = memref.load %arg4[%c3_50, %c5_51] : memref<4x8xf32, #tpu.memory_space<smem>>
    %c3_52 = arith.constant 3 : index
    %c6_53 = arith.constant 6 : index
    %30 = memref.load %arg4[%c3_52, %c6_53] : memref<4x8xf32, #tpu.memory_space<smem>>
    %c3_54 = arith.constant 3 : index
    %c7_55 = arith.constant 7 : index
    %31 = memref.load %arg4[%c3_54, %c7_55] : memref<4x8xf32, #tpu.memory_space<smem>>
    %c0_56 = arith.constant 0 : index
    %32 = memref.load %arg5[%c0_56] : memref<8xf32, #tpu.memory_space<smem>>
    %c1_57 = arith.constant 1 : index
    %33 = memref.load %arg5[%c1_57] : memref<8xf32, #tpu.memory_space<smem>>
    %c2_58 = arith.constant 2 : index
    %34 = memref.load %arg5[%c2_58] : memref<8xf32, #tpu.memory_space<smem>>
    %c3_59 = arith.constant 3 : index
    %35 = memref.load %arg5[%c3_59] : memref<8xf32, #tpu.memory_space<smem>>
    %c4_60 = arith.constant 4 : index
    %36 = memref.load %arg5[%c4_60] : memref<8xf32, #tpu.memory_space<smem>>
    %c5_61 = arith.constant 5 : index
    %37 = memref.load %arg5[%c5_61] : memref<8xf32, #tpu.memory_space<smem>>
    %c6_62 = arith.constant 6 : index
    %38 = memref.load %arg5[%c6_62] : memref<8xf32, #tpu.memory_space<smem>>
    %c7_63 = arith.constant 7 : index
    %39 = memref.load %arg5[%c7_63] : memref<8xf32, #tpu.memory_space<smem>>
    %c0_64 = arith.constant 0 : index
    %c0_65 = arith.constant 0 : index
    %40 = memref.load %arg6[%c0_64, %c0_65] : memref<8x4xf32, #tpu.memory_space<smem>>
    %c0_66 = arith.constant 0 : index
    %c1_67 = arith.constant 1 : index
    %41 = memref.load %arg6[%c0_66, %c1_67] : memref<8x4xf32, #tpu.memory_space<smem>>
    %c0_68 = arith.constant 0 : index
    %c2_69 = arith.constant 2 : index
    %42 = memref.load %arg6[%c0_68, %c2_69] : memref<8x4xf32, #tpu.memory_space<smem>>
    %c0_70 = arith.constant 0 : index
    %c3_71 = arith.constant 3 : index
    %43 = memref.load %arg6[%c0_70, %c3_71] : memref<8x4xf32, #tpu.memory_space<smem>>
    %c1_72 = arith.constant 1 : index
    %c0_73 = arith.constant 0 : index
    %44 = memref.load %arg6[%c1_72, %c0_73] : memref<8x4xf32, #tpu.memory_space<smem>>
    %c1_74 = arith.constant 1 : index
    %c1_75 = arith.constant 1 : index
    %45 = memref.load %arg6[%c1_74, %c1_75] : memref<8x4xf32, #tpu.memory_space<smem>>
    %c1_76 = arith.constant 1 : index
    %c2_77 = arith.constant 2 : index
    %46 = memref.load %arg6[%c1_76, %c2_77] : memref<8x4xf32, #tpu.memory_space<smem>>
    %c1_78 = arith.constant 1 : index
    %c3_79 = arith.constant 3 : index
    %47 = memref.load %arg6[%c1_78, %c3_79] : memref<8x4xf32, #tpu.memory_space<smem>>
    %c2_80 = arith.constant 2 : index
    %c0_81 = arith.constant 0 : index
    %48 = memref.load %arg6[%c2_80, %c0_81] : memref<8x4xf32, #tpu.memory_space<smem>>
    %c2_82 = arith.constant 2 : index
    %c1_83 = arith.constant 1 : index
    %49 = memref.load %arg6[%c2_82, %c1_83] : memref<8x4xf32, #tpu.memory_space<smem>>
    %c2_84 = arith.constant 2 : index
    %c2_85 = arith.constant 2 : index
    %50 = memref.load %arg6[%c2_84, %c2_85] : memref<8x4xf32, #tpu.memory_space<smem>>
    %c2_86 = arith.constant 2 : index
    %c3_87 = arith.constant 3 : index
    %51 = memref.load %arg6[%c2_86, %c3_87] : memref<8x4xf32, #tpu.memory_space<smem>>
    %c3_88 = arith.constant 3 : index
    %c0_89 = arith.constant 0 : index
    %52 = memref.load %arg6[%c3_88, %c0_89] : memref<8x4xf32, #tpu.memory_space<smem>>
    %c3_90 = arith.constant 3 : index
    %c1_91 = arith.constant 1 : index
    %53 = memref.load %arg6[%c3_90, %c1_91] : memref<8x4xf32, #tpu.memory_space<smem>>
    %c3_92 = arith.constant 3 : index
    %c2_93 = arith.constant 2 : index
    %54 = memref.load %arg6[%c3_92, %c2_93] : memref<8x4xf32, #tpu.memory_space<smem>>
    %c3_94 = arith.constant 3 : index
    %c3_95 = arith.constant 3 : index
    %55 = memref.load %arg6[%c3_94, %c3_95] : memref<8x4xf32, #tpu.memory_space<smem>>
    %c4_96 = arith.constant 4 : index
    %c0_97 = arith.constant 0 : index
    %56 = memref.load %arg6[%c4_96, %c0_97] : memref<8x4xf32, #tpu.memory_space<smem>>
    %c4_98 = arith.constant 4 : index
    %c1_99 = arith.constant 1 : index
    %57 = memref.load %arg6[%c4_98, %c1_99] : memref<8x4xf32, #tpu.memory_space<smem>>
    %c4_100 = arith.constant 4 : index
    %c2_101 = arith.constant 2 : index
    %58 = memref.load %arg6[%c4_100, %c2_101] : memref<8x4xf32, #tpu.memory_space<smem>>
    %c4_102 = arith.constant 4 : index
    %c3_103 = arith.constant 3 : index
    %59 = memref.load %arg6[%c4_102, %c3_103] : memref<8x4xf32, #tpu.memory_space<smem>>
    %c5_104 = arith.constant 5 : index
    %c0_105 = arith.constant 0 : index
    %60 = memref.load %arg6[%c5_104, %c0_105] : memref<8x4xf32, #tpu.memory_space<smem>>
    %c5_106 = arith.constant 5 : index
    %c1_107 = arith.constant 1 : index
    %61 = memref.load %arg6[%c5_106, %c1_107] : memref<8x4xf32, #tpu.memory_space<smem>>
    %c5_108 = arith.constant 5 : index
    %c2_109 = arith.constant 2 : index
    %62 = memref.load %arg6[%c5_108, %c2_109] : memref<8x4xf32, #tpu.memory_space<smem>>
    %c5_110 = arith.constant 5 : index
    %c3_111 = arith.constant 3 : index
    %63 = memref.load %arg6[%c5_110, %c3_111] : memref<8x4xf32, #tpu.memory_space<smem>>
    %c6_112 = arith.constant 6 : index
    %c0_113 = arith.constant 0 : index
    %64 = memref.load %arg6[%c6_112, %c0_113] : memref<8x4xf32, #tpu.memory_space<smem>>
    %c6_114 = arith.constant 6 : index
    %c1_115 = arith.constant 1 : index
    %65 = memref.load %arg6[%c6_114, %c1_115] : memref<8x4xf32, #tpu.memory_space<smem>>
    %c6_116 = arith.constant 6 : index
    %c2_117 = arith.constant 2 : index
    %66 = memref.load %arg6[%c6_116, %c2_117] : memref<8x4xf32, #tpu.memory_space<smem>>
    %c6_118 = arith.constant 6 : index
    %c3_119 = arith.constant 3 : index
    %67 = memref.load %arg6[%c6_118, %c3_119] : memref<8x4xf32, #tpu.memory_space<smem>>
    %c7_120 = arith.constant 7 : index
    %c0_121 = arith.constant 0 : index
    %68 = memref.load %arg6[%c7_120, %c0_121] : memref<8x4xf32, #tpu.memory_space<smem>>
    %c7_122 = arith.constant 7 : index
    %c1_123 = arith.constant 1 : index
    %69 = memref.load %arg6[%c7_122, %c1_123] : memref<8x4xf32, #tpu.memory_space<smem>>
    %c7_124 = arith.constant 7 : index
    %c2_125 = arith.constant 2 : index
    %70 = memref.load %arg6[%c7_124, %c2_125] : memref<8x4xf32, #tpu.memory_space<smem>>
    %c7_126 = arith.constant 7 : index
    %c3_127 = arith.constant 3 : index
    %71 = memref.load %arg6[%c7_126, %c3_127] : memref<8x4xf32, #tpu.memory_space<smem>>
    %c0_128 = arith.constant 0 : index
    %72 = memref.load %arg7[%c0_128] : memref<4xf32, #tpu.memory_space<smem>>
    %c1_129 = arith.constant 1 : index
    %73 = memref.load %arg7[%c1_129] : memref<4xf32, #tpu.memory_space<smem>>
    %c2_130 = arith.constant 2 : index
    %74 = memref.load %arg7[%c2_130] : memref<4xf32, #tpu.memory_space<smem>>
    %c3_131 = arith.constant 3 : index
    %75 = memref.load %arg7[%c3_131] : memref<4xf32, #tpu.memory_space<smem>>
    %c0_i32 = arith.constant 0 : i32
    %c8_i32 = arith.constant 8 : i32
    %76 = arith.muli %c0_i32, %c8_i32 : i32
    %77 = tpu.assume_multiple %76, 8 : i32
    %c0_132 = arith.constant 0 : index
    %c0_133 = arith.constant 0 : index
    %78 = arith.index_cast %77 : i32 to index
    %c0_134 = arith.constant 0 : index
    %79 = vector.load %arg3[%c0_132, %c0_133, %78, %c0_134] : memref<1x4x8x128xf32, #tpu.memory_space<vmem>>, vector<1x1x8x128xf32>
    %80 = vector.shape_cast %79 : vector<1x1x8x128xf32> to vector<8x128xf32>
    %c0_135 = arith.constant 0 : index
    %c0_136 = arith.constant 0 : index
    %81 = arith.index_cast %77 : i32 to index
    %c0_137 = arith.constant 0 : index
    %82 = vector.load %arg2[%c0_135, %c0_136, %81, %c0_137] : memref<1x4x8x128xf32, #tpu.memory_space<vmem>>, vector<1x1x8x128xf32>
    %83 = vector.shape_cast %82 : vector<1x1x8x128xf32> to vector<8x128xf32>
    %84 = arith.subf %80, %83 : vector<8x128xf32>
    %c0_138 = arith.constant 0 : index
    %c1_139 = arith.constant 1 : index
    %85 = arith.index_cast %77 : i32 to index
    %c0_140 = arith.constant 0 : index
    %86 = vector.load %arg3[%c0_138, %c1_139, %85, %c0_140] : memref<1x4x8x128xf32, #tpu.memory_space<vmem>>, vector<1x1x8x128xf32>
    %87 = vector.shape_cast %86 : vector<1x1x8x128xf32> to vector<8x128xf32>
    %c0_141 = arith.constant 0 : index
    %c1_142 = arith.constant 1 : index
    %88 = arith.index_cast %77 : i32 to index
    %c0_143 = arith.constant 0 : index
    %89 = vector.load %arg2[%c0_141, %c1_142, %88, %c0_143] : memref<1x4x8x128xf32, #tpu.memory_space<vmem>>, vector<1x1x8x128xf32>
    %90 = vector.shape_cast %89 : vector<1x1x8x128xf32> to vector<8x128xf32>
    %91 = arith.subf %87, %90 : vector<8x128xf32>
    %c0_144 = arith.constant 0 : index
    %c2_145 = arith.constant 2 : index
    %92 = arith.index_cast %77 : i32 to index
    %c0_146 = arith.constant 0 : index
    %93 = vector.load %arg3[%c0_144, %c2_145, %92, %c0_146] : memref<1x4x8x128xf32, #tpu.memory_space<vmem>>, vector<1x1x8x128xf32>
    %94 = vector.shape_cast %93 : vector<1x1x8x128xf32> to vector<8x128xf32>
    %c0_147 = arith.constant 0 : index
    %c2_148 = arith.constant 2 : index
    %95 = arith.index_cast %77 : i32 to index
    %c0_149 = arith.constant 0 : index
    %96 = vector.load %arg2[%c0_147, %c2_148, %95, %c0_149] : memref<1x4x8x128xf32, #tpu.memory_space<vmem>>, vector<1x1x8x128xf32>
    %97 = vector.shape_cast %96 : vector<1x1x8x128xf32> to vector<8x128xf32>
    %98 = arith.subf %94, %97 : vector<8x128xf32>
    %c0_150 = arith.constant 0 : index
    %c3_151 = arith.constant 3 : index
    %99 = arith.index_cast %77 : i32 to index
    %c0_152 = arith.constant 0 : index
    %100 = vector.load %arg3[%c0_150, %c3_151, %99, %c0_152] : memref<1x4x8x128xf32, #tpu.memory_space<vmem>>, vector<1x1x8x128xf32>
    %101 = vector.shape_cast %100 : vector<1x1x8x128xf32> to vector<8x128xf32>
    %c0_153 = arith.constant 0 : index
    %c3_154 = arith.constant 3 : index
    %102 = arith.index_cast %77 : i32 to index
    %c0_155 = arith.constant 0 : index
    %103 = vector.load %arg2[%c0_153, %c3_154, %102, %c0_155] : memref<1x4x8x128xf32, #tpu.memory_space<vmem>>, vector<1x1x8x128xf32>
    %104 = vector.shape_cast %103 : vector<1x1x8x128xf32> to vector<8x128xf32>
    %105 = arith.subf %101, %104 : vector<8x128xf32>
    %106 = vector.broadcast %0 : f32 to vector<8x128xf32>
    %107 = arith.mulf %84, %106 : vector<8x128xf32>
    %108 = vector.broadcast %8 : f32 to vector<8x128xf32>
    %109 = arith.mulf %91, %108 : vector<8x128xf32>
    %110 = arith.addf %107, %109 : vector<8x128xf32>
    %111 = vector.broadcast %16 : f32 to vector<8x128xf32>
    %112 = arith.mulf %98, %111 : vector<8x128xf32>
    %113 = arith.addf %110, %112 : vector<8x128xf32>
    %114 = vector.broadcast %24 : f32 to vector<8x128xf32>
    %115 = arith.mulf %105, %114 : vector<8x128xf32>
    %116 = arith.addf %113, %115 : vector<8x128xf32>
    %117 = vector.broadcast %32 : f32 to vector<8x128xf32>
    %118 = arith.addf %116, %117 : vector<8x128xf32>
    %cst = arith.constant 2.000000e+01 : f32
    %119 = vector.broadcast %cst : f32 to vector<8x128xf32>
    %120 = arith.minimumf %118, %119 : vector<8x128xf32>
    %121 = math.exp %120 : vector<8x128xf32>
    %cst_156 = arith.constant 2.000000e+00 : f32
    %122 = vector.broadcast %cst_156 : f32 to vector<8x128xf32>
    %123 = arith.addf %121, %122 : vector<8x128xf32>
    %124 = arith.mulf %121, %123 : vector<8x128xf32>
    %125 = arith.mulf %118, %124 : vector<8x128xf32>
    %cst_157 = arith.constant 2.000000e+00 : f32
    %126 = vector.broadcast %cst_157 : f32 to vector<8x128xf32>
    %127 = arith.addf %124, %126 : vector<8x128xf32>
    %128 = tpu.reciprocal %127 {approx = true} : vector<8x128xf32> -> vector<8x128xf32>
    %129 = arith.mulf %125, %128 : vector<8x128xf32>
    %130 = vector.broadcast %1 : f32 to vector<8x128xf32>
    %131 = arith.mulf %84, %130 : vector<8x128xf32>
    %132 = vector.broadcast %9 : f32 to vector<8x128xf32>
    %133 = arith.mulf %91, %132 : vector<8x128xf32>
    %134 = arith.addf %131, %133 : vector<8x128xf32>
    %135 = vector.broadcast %17 : f32 to vector<8x128xf32>
    %136 = arith.mulf %98, %135 : vector<8x128xf32>
    %137 = arith.addf %134, %136 : vector<8x128xf32>
    %138 = vector.broadcast %25 : f32 to vector<8x128xf32>
    %139 = arith.mulf %105, %138 : vector<8x128xf32>
    %140 = arith.addf %137, %139 : vector<8x128xf32>
    %141 = vector.broadcast %33 : f32 to vector<8x128xf32>
    %142 = arith.addf %140, %141 : vector<8x128xf32>
    %cst_158 = arith.constant 2.000000e+01 : f32
    %143 = vector.broadcast %cst_158 : f32 to vector<8x128xf32>
    %144 = arith.minimumf %142, %143 : vector<8x128xf32>
    %145 = math.exp %144 : vector<8x128xf32>
    %cst_159 = arith.constant 2.000000e+00 : f32
    %146 = vector.broadcast %cst_159 : f32 to vector<8x128xf32>
    %147 = arith.addf %145, %146 : vector<8x128xf32>
    %148 = arith.mulf %145, %147 : vector<8x128xf32>
    %149 = arith.mulf %142, %148 : vector<8x128xf32>
    %cst_160 = arith.constant 2.000000e+00 : f32
    %150 = vector.broadcast %cst_160 : f32 to vector<8x128xf32>
    %151 = arith.addf %148, %150 : vector<8x128xf32>
    %152 = tpu.reciprocal %151 {approx = true} : vector<8x128xf32> -> vector<8x128xf32>
    %153 = arith.mulf %149, %152 : vector<8x128xf32>
    %154 = vector.broadcast %2 : f32 to vector<8x128xf32>
    %155 = arith.mulf %84, %154 : vector<8x128xf32>
    %156 = vector.broadcast %10 : f32 to vector<8x128xf32>
    %157 = arith.mulf %91, %156 : vector<8x128xf32>
    %158 = arith.addf %155, %157 : vector<8x128xf32>
    %159 = vector.broadcast %18 : f32 to vector<8x128xf32>
    %160 = arith.mulf %98, %159 : vector<8x128xf32>
    %161 = arith.addf %158, %160 : vector<8x128xf32>
    %162 = vector.broadcast %26 : f32 to vector<8x128xf32>
    %163 = arith.mulf %105, %162 : vector<8x128xf32>
    %164 = arith.addf %161, %163 : vector<8x128xf32>
    %165 = vector.broadcast %34 : f32 to vector<8x128xf32>
    %166 = arith.addf %164, %165 : vector<8x128xf32>
    %cst_161 = arith.constant 2.000000e+01 : f32
    %167 = vector.broadcast %cst_161 : f32 to vector<8x128xf32>
    %168 = arith.minimumf %166, %167 : vector<8x128xf32>
    %169 = math.exp %168 : vector<8x128xf32>
    %cst_162 = arith.constant 2.000000e+00 : f32
    %170 = vector.broadcast %cst_162 : f32 to vector<8x128xf32>
    %171 = arith.addf %169, %170 : vector<8x128xf32>
    %172 = arith.mulf %169, %171 : vector<8x128xf32>
    %173 = arith.mulf %166, %172 : vector<8x128xf32>
    %cst_163 = arith.constant 2.000000e+00 : f32
    %174 = vector.broadcast %cst_163 : f32 to vector<8x128xf32>
    %175 = arith.addf %172, %174 : vector<8x128xf32>
    %176 = tpu.reciprocal %175 {approx = true} : vector<8x128xf32> -> vector<8x128xf32>
    %177 = arith.mulf %173, %176 : vector<8x128xf32>
    %178 = vector.broadcast %3 : f32 to vector<8x128xf32>
    %179 = arith.mulf %84, %178 : vector<8x128xf32>
    %180 = vector.broadcast %11 : f32 to vector<8x128xf32>
    %181 = arith.mulf %91, %180 : vector<8x128xf32>
    %182 = arith.addf %179, %181 : vector<8x128xf32>
    %183 = vector.broadcast %19 : f32 to vector<8x128xf32>
    %184 = arith.mulf %98, %183 : vector<8x128xf32>
    %185 = arith.addf %182, %184 : vector<8x128xf32>
    %186 = vector.broadcast %27 : f32 to vector<8x128xf32>
    %187 = arith.mulf %105, %186 : vector<8x128xf32>
    %188 = arith.addf %185, %187 : vector<8x128xf32>
    %189 = vector.broadcast %35 : f32 to vector<8x128xf32>
    %190 = arith.addf %188, %189 : vector<8x128xf32>
    %cst_164 = arith.constant 2.000000e+01 : f32
    %191 = vector.broadcast %cst_164 : f32 to vector<8x128xf32>
    %192 = arith.minimumf %190, %191 : vector<8x128xf32>
    %193 = math.exp %192 : vector<8x128xf32>
    %cst_165 = arith.constant 2.000000e+00 : f32
    %194 = vector.broadcast %cst_165 : f32 to vector<8x128xf32>
    %195 = arith.addf %193, %194 : vector<8x128xf32>
    %196 = arith.mulf %193, %195 : vector<8x128xf32>
    %197 = arith.mulf %190, %196 : vector<8x128xf32>
    %cst_166 = arith.constant 2.000000e+00 : f32
    %198 = vector.broadcast %cst_166 : f32 to vector<8x128xf32>
    %199 = arith.addf %196, %198 : vector<8x128xf32>
    %200 = tpu.reciprocal %199 {approx = true} : vector<8x128xf32> -> vector<8x128xf32>
    %201 = arith.mulf %197, %200 : vector<8x128xf32>
    %202 = vector.broadcast %4 : f32 to vector<8x128xf32>
    %203 = arith.mulf %84, %202 : vector<8x128xf32>
    %204 = vector.broadcast %12 : f32 to vector<8x128xf32>
    %205 = arith.mulf %91, %204 : vector<8x128xf32>
    %206 = arith.addf %203, %205 : vector<8x128xf32>
    %207 = vector.broadcast %20 : f32 to vector<8x128xf32>
    %208 = arith.mulf %98, %207 : vector<8x128xf32>
    %209 = arith.addf %206, %208 : vector<8x128xf32>
    %210 = vector.broadcast %28 : f32 to vector<8x128xf32>
    %211 = arith.mulf %105, %210 : vector<8x128xf32>
    %212 = arith.addf %209, %211 : vector<8x128xf32>
    %213 = vector.broadcast %36 : f32 to vector<8x128xf32>
    %214 = arith.addf %212, %213 : vector<8x128xf32>
    %cst_167 = arith.constant 2.000000e+01 : f32
    %215 = vector.broadcast %cst_167 : f32 to vector<8x128xf32>
    %216 = arith.minimumf %214, %215 : vector<8x128xf32>
    %217 = math.exp %216 : vector<8x128xf32>
    %cst_168 = arith.constant 2.000000e+00 : f32
    %218 = vector.broadcast %cst_168 : f32 to vector<8x128xf32>
    %219 = arith.addf %217, %218 : vector<8x128xf32>
    %220 = arith.mulf %217, %219 : vector<8x128xf32>
    %221 = arith.mulf %214, %220 : vector<8x128xf32>
    %cst_169 = arith.constant 2.000000e+00 : f32
    %222 = vector.broadcast %cst_169 : f32 to vector<8x128xf32>
    %223 = arith.addf %220, %222 : vector<8x128xf32>
    %224 = tpu.reciprocal %223 {approx = true} : vector<8x128xf32> -> vector<8x128xf32>
    %225 = arith.mulf %221, %224 : vector<8x128xf32>
    %226 = vector.broadcast %5 : f32 to vector<8x128xf32>
    %227 = arith.mulf %84, %226 : vector<8x128xf32>
    %228 = vector.broadcast %13 : f32 to vector<8x128xf32>
    %229 = arith.mulf %91, %228 : vector<8x128xf32>
    %230 = arith.addf %227, %229 : vector<8x128xf32>
    %231 = vector.broadcast %21 : f32 to vector<8x128xf32>
    %232 = arith.mulf %98, %231 : vector<8x128xf32>
    %233 = arith.addf %230, %232 : vector<8x128xf32>
    %234 = vector.broadcast %29 : f32 to vector<8x128xf32>
    %235 = arith.mulf %105, %234 : vector<8x128xf32>
    %236 = arith.addf %233, %235 : vector<8x128xf32>
    %237 = vector.broadcast %37 : f32 to vector<8x128xf32>
    %238 = arith.addf %236, %237 : vector<8x128xf32>
    %cst_170 = arith.constant 2.000000e+01 : f32
    %239 = vector.broadcast %cst_170 : f32 to vector<8x128xf32>
    %240 = arith.minimumf %238, %239 : vector<8x128xf32>
    %241 = math.exp %240 : vector<8x128xf32>
    %cst_171 = arith.constant 2.000000e+00 : f32
    %242 = vector.broadcast %cst_171 : f32 to vector<8x128xf32>
    %243 = arith.addf %241, %242 : vector<8x128xf32>
    %244 = arith.mulf %241, %243 : vector<8x128xf32>
    %245 = arith.mulf %238, %244 : vector<8x128xf32>
    %cst_172 = arith.constant 2.000000e+00 : f32
    %246 = vector.broadcast %cst_172 : f32 to vector<8x128xf32>
    %247 = arith.addf %244, %246 : vector<8x128xf32>
    %248 = tpu.reciprocal %247 {approx = true} : vector<8x128xf32> -> vector<8x128xf32>
    %249 = arith.mulf %245, %248 : vector<8x128xf32>
    %250 = vector.broadcast %6 : f32 to vector<8x128xf32>
    %251 = arith.mulf %84, %250 : vector<8x128xf32>
    %252 = vector.broadcast %14 : f32 to vector<8x128xf32>
    %253 = arith.mulf %91, %252 : vector<8x128xf32>
    %254 = arith.addf %251, %253 : vector<8x128xf32>
    %255 = vector.broadcast %22 : f32 to vector<8x128xf32>
    %256 = arith.mulf %98, %255 : vector<8x128xf32>
    %257 = arith.addf %254, %256 : vector<8x128xf32>
    %258 = vector.broadcast %30 : f32 to vector<8x128xf32>
    %259 = arith.mulf %105, %258 : vector<8x128xf32>
    %260 = arith.addf %257, %259 : vector<8x128xf32>
    %261 = vector.broadcast %38 : f32 to vector<8x128xf32>
    %262 = arith.addf %260, %261 : vector<8x128xf32>
    %cst_173 = arith.constant 2.000000e+01 : f32
    %263 = vector.broadcast %cst_173 : f32 to vector<8x128xf32>
    %264 = arith.minimumf %262, %263 : vector<8x128xf32>
    %265 = math.exp %264 : vector<8x128xf32>
    %cst_174 = arith.constant 2.000000e+00 : f32
    %266 = vector.broadcast %cst_174 : f32 to vector<8x128xf32>
    %267 = arith.addf %265, %266 : vector<8x128xf32>
    %268 = arith.mulf %265, %267 : vector<8x128xf32>
    %269 = arith.mulf %262, %268 : vector<8x128xf32>
    %cst_175 = arith.constant 2.000000e+00 : f32
    %270 = vector.broadcast %cst_175 : f32 to vector<8x128xf32>
    %271 = arith.addf %268, %270 : vector<8x128xf32>
    %272 = tpu.reciprocal %271 {approx = true} : vector<8x128xf32> -> vector<8x128xf32>
    %273 = arith.mulf %269, %272 : vector<8x128xf32>
    %274 = vector.broadcast %7 : f32 to vector<8x128xf32>
    %275 = arith.mulf %84, %274 : vector<8x128xf32>
    %276 = vector.broadcast %15 : f32 to vector<8x128xf32>
    %277 = arith.mulf %91, %276 : vector<8x128xf32>
    %278 = arith.addf %275, %277 : vector<8x128xf32>
    %279 = vector.broadcast %23 : f32 to vector<8x128xf32>
    %280 = arith.mulf %98, %279 : vector<8x128xf32>
    %281 = arith.addf %278, %280 : vector<8x128xf32>
    %282 = vector.broadcast %31 : f32 to vector<8x128xf32>
    %283 = arith.mulf %105, %282 : vector<8x128xf32>
    %284 = arith.addf %281, %283 : vector<8x128xf32>
    %285 = vector.broadcast %39 : f32 to vector<8x128xf32>
    %286 = arith.addf %284, %285 : vector<8x128xf32>
    %cst_176 = arith.constant 2.000000e+01 : f32
    %287 = vector.broadcast %cst_176 : f32 to vector<8x128xf32>
    %288 = arith.minimumf %286, %287 : vector<8x128xf32>
    %289 = math.exp %288 : vector<8x128xf32>
    %cst_177 = arith.constant 2.000000e+00 : f32
    %290 = vector.broadcast %cst_177 : f32 to vector<8x128xf32>
    %291 = arith.addf %289, %290 : vector<8x128xf32>
    %292 = arith.mulf %289, %291 : vector<8x128xf32>
    %293 = arith.mulf %286, %292 : vector<8x128xf32>
    %cst_178 = arith.constant 2.000000e+00 : f32
    %294 = vector.broadcast %cst_178 : f32 to vector<8x128xf32>
    %295 = arith.addf %292, %294 : vector<8x128xf32>
    %296 = tpu.reciprocal %295 {approx = true} : vector<8x128xf32> -> vector<8x128xf32>
    %297 = arith.mulf %293, %296 : vector<8x128xf32>
    %298 = vector.broadcast %40 : f32 to vector<8x128xf32>
    %299 = arith.mulf %129, %298 : vector<8x128xf32>
    %300 = vector.broadcast %44 : f32 to vector<8x128xf32>
    %301 = arith.mulf %153, %300 : vector<8x128xf32>
    %302 = arith.addf %299, %301 : vector<8x128xf32>
    %303 = vector.broadcast %48 : f32 to vector<8x128xf32>
    %304 = arith.mulf %177, %303 : vector<8x128xf32>
    %305 = arith.addf %302, %304 : vector<8x128xf32>
    %306 = vector.broadcast %52 : f32 to vector<8x128xf32>
    %307 = arith.mulf %201, %306 : vector<8x128xf32>
    %308 = arith.addf %305, %307 : vector<8x128xf32>
    %309 = vector.broadcast %56 : f32 to vector<8x128xf32>
    %310 = arith.mulf %225, %309 : vector<8x128xf32>
    %311 = arith.addf %308, %310 : vector<8x128xf32>
    %312 = vector.broadcast %60 : f32 to vector<8x128xf32>
    %313 = arith.mulf %249, %312 : vector<8x128xf32>
    %314 = arith.addf %311, %313 : vector<8x128xf32>
    %315 = vector.broadcast %64 : f32 to vector<8x128xf32>
    %316 = arith.mulf %273, %315 : vector<8x128xf32>
    %317 = arith.addf %314, %316 : vector<8x128xf32>
    %318 = vector.broadcast %68 : f32 to vector<8x128xf32>
    %319 = arith.mulf %297, %318 : vector<8x128xf32>
    %320 = arith.addf %317, %319 : vector<8x128xf32>
    %321 = vector.broadcast %72 : f32 to vector<8x128xf32>
    %322 = arith.addf %320, %321 : vector<8x128xf32>
    %cst_179 = arith.constant 2.000000e+01 : f32
    %323 = vector.broadcast %cst_179 : f32 to vector<8x128xf32>
    %324 = arith.minimumf %322, %323 : vector<8x128xf32>
    %325 = math.exp %324 : vector<8x128xf32>
    %cst_180 = arith.constant 2.000000e+00 : f32
    %326 = vector.broadcast %cst_180 : f32 to vector<8x128xf32>
    %327 = arith.addf %325, %326 : vector<8x128xf32>
    %328 = arith.mulf %325, %327 : vector<8x128xf32>
    %329 = arith.mulf %322, %328 : vector<8x128xf32>
    %cst_181 = arith.constant 2.000000e+00 : f32
    %330 = vector.broadcast %cst_181 : f32 to vector<8x128xf32>
    %331 = arith.addf %328, %330 : vector<8x128xf32>
    %332 = tpu.reciprocal %331 {approx = true} : vector<8x128xf32> -> vector<8x128xf32>
    %333 = arith.mulf %329, %332 : vector<8x128xf32>
    %c0_182 = arith.constant 0 : index
    %c0_183 = arith.constant 0 : index
    %334 = arith.index_cast %77 : i32 to index
    %c0_184 = arith.constant 0 : index
    %335 = vector.load %arg8[%c0_182, %c0_183, %334, %c0_184] : memref<1x4x8x128xf32, #tpu.memory_space<vmem>>, vector<1x1x8x128xf32>
    %336 = vector.shape_cast %335 : vector<1x1x8x128xf32> to vector<8x128xf32>
    %337 = vector.shape_cast %333 : vector<8x128xf32> to vector<1x1x8x128xf32>
    tpu.vector_store %arg8[%c0_182, %c0_183, %334, %c0_184], %337 {strides = array<i32>} : memref<1x4x8x128xf32, #tpu.memory_space<vmem>>, vector<1x1x8x128xf32>,
    %338 = vector.broadcast %41 : f32 to vector<8x128xf32>
    %339 = arith.mulf %129, %338 : vector<8x128xf32>
    %340 = vector.broadcast %45 : f32 to vector<8x128xf32>
    %341 = arith.mulf %153, %340 : vector<8x128xf32>
    %342 = arith.addf %339, %341 : vector<8x128xf32>
    %343 = vector.broadcast %49 : f32 to vector<8x128xf32>
    %344 = arith.mulf %177, %343 : vector<8x128xf32>
    %345 = arith.addf %342, %344 : vector<8x128xf32>
    %346 = vector.broadcast %53 : f32 to vector<8x128xf32>
    %347 = arith.mulf %201, %346 : vector<8x128xf32>
    %348 = arith.addf %345, %347 : vector<8x128xf32>
    %349 = vector.broadcast %57 : f32 to vector<8x128xf32>
    %350 = arith.mulf %225, %349 : vector<8x128xf32>
    %351 = arith.addf %348, %350 : vector<8x128xf32>
    %352 = vector.broadcast %61 : f32 to vector<8x128xf32>
    %353 = arith.mulf %249, %352 : vector<8x128xf32>
    %354 = arith.addf %351, %353 : vector<8x128xf32>
    %355 = vector.broadcast %65 : f32 to vector<8x128xf32>
    %356 = arith.mulf %273, %355 : vector<8x128xf32>
    %357 = arith.addf %354, %356 : vector<8x128xf32>
    %358 = vector.broadcast %69 : f32 to vector<8x128xf32>
    %359 = arith.mulf %297, %358 : vector<8x128xf32>
    %360 = arith.addf %357, %359 : vector<8x128xf32>
    %361 = vector.broadcast %73 : f32 to vector<8x128xf32>
    %362 = arith.addf %360, %361 : vector<8x128xf32>
    %cst_185 = arith.constant 2.000000e+01 : f32
    %363 = vector.broadcast %cst_185 : f32 to vector<8x128xf32>
    %364 = arith.minimumf %362, %363 : vector<8x128xf32>
    %365 = math.exp %364 : vector<8x128xf32>
    %cst_186 = arith.constant 2.000000e+00 : f32
    %366 = vector.broadcast %cst_186 : f32 to vector<8x128xf32>
    %367 = arith.addf %365, %366 : vector<8x128xf32>
    %368 = arith.mulf %365, %367 : vector<8x128xf32>
    %369 = arith.mulf %362, %368 : vector<8x128xf32>
    %cst_187 = arith.constant 2.000000e+00 : f32
    %370 = vector.broadcast %cst_187 : f32 to vector<8x128xf32>
    %371 = arith.addf %368, %370 : vector<8x128xf32>
    %372 = tpu.reciprocal %371 {approx = true} : vector<8x128xf32> -> vector<8x128xf32>
    %373 = arith.mulf %369, %372 : vector<8x128xf32>
    %c0_188 = arith.constant 0 : index
    %c1_189 = arith.constant 1 : index
    %374 = arith.index_cast %77 : i32 to index
    %c0_190 = arith.constant 0 : index
    %375 = vector.load %arg8[%c0_188, %c1_189, %374, %c0_190] : memref<1x4x8x128xf32, #tpu.memory_space<vmem>>, vector<1x1x8x128xf32>
    %376 = vector.shape_cast %375 : vector<1x1x8x128xf32> to vector<8x128xf32>
    %377 = vector.shape_cast %373 : vector<8x128xf32> to vector<1x1x8x128xf32>
    tpu.vector_store %arg8[%c0_188, %c1_189, %374, %c0_190], %377 {strides = array<i32>} : memref<1x4x8x128xf32, #tpu.memory_space<vmem>>, vector<1x1x8x128xf32>,
    %378 = vector.broadcast %42 : f32 to vector<8x128xf32>
    %379 = arith.mulf %129, %378 : vector<8x128xf32>
    %380 = vector.broadcast %46 : f32 to vector<8x128xf32>
    %381 = arith.mulf %153, %380 : vector<8x128xf32>
    %382 = arith.addf %379, %381 : vector<8x128xf32>
    %383 = vector.broadcast %50 : f32 to vector<8x128xf32>
    %384 = arith.mulf %177, %383 : vector<8x128xf32>
    %385 = arith.addf %382, %384 : vector<8x128xf32>
    %386 = vector.broadcast %54 : f32 to vector<8x128xf32>
    %387 = arith.mulf %201, %386 : vector<8x128xf32>
    %388 = arith.addf %385, %387 : vector<8x128xf32>
    %389 = vector.broadcast %58 : f32 to vector<8x128xf32>
    %390 = arith.mulf %225, %389 : vector<8x128xf32>
    %391 = arith.addf %388, %390 : vector<8x128xf32>
    %392 = vector.broadcast %62 : f32 to vector<8x128xf32>
    %393 = arith.mulf %249, %392 : vector<8x128xf32>
    %394 = arith.addf %391, %393 : vector<8x128xf32>
    %395 = vector.broadcast %66 : f32 to vector<8x128xf32>
    %396 = arith.mulf %273, %395 : vector<8x128xf32>
    %397 = arith.addf %394, %396 : vector<8x128xf32>
    %398 = vector.broadcast %70 : f32 to vector<8x128xf32>
    %399 = arith.mulf %297, %398 : vector<8x128xf32>
    %400 = arith.addf %397, %399 : vector<8x128xf32>
    %401 = vector.broadcast %74 : f32 to vector<8x128xf32>
    %402 = arith.addf %400, %401 : vector<8x128xf32>
    %cst_191 = arith.constant 2.000000e+01 : f32
    %403 = vector.broadcast %cst_191 : f32 to vector<8x128xf32>
    %404 = arith.minimumf %402, %403 : vector<8x128xf32>
    %405 = math.exp %404 : vector<8x128xf32>
    %cst_192 = arith.constant 2.000000e+00 : f32
    %406 = vector.broadcast %cst_192 : f32 to vector<8x128xf32>
    %407 = arith.addf %405, %406 : vector<8x128xf32>
    %408 = arith.mulf %405, %407 : vector<8x128xf32>
    %409 = arith.mulf %402, %408 : vector<8x128xf32>
    %cst_193 = arith.constant 2.000000e+00 : f32
    %410 = vector.broadcast %cst_193 : f32 to vector<8x128xf32>
    %411 = arith.addf %408, %410 : vector<8x128xf32>
    %412 = tpu.reciprocal %411 {approx = true} : vector<8x128xf32> -> vector<8x128xf32>
    %413 = arith.mulf %409, %412 : vector<8x128xf32>
    %c0_194 = arith.constant 0 : index
    %c2_195 = arith.constant 2 : index
    %414 = arith.index_cast %77 : i32 to index
    %c0_196 = arith.constant 0 : index
    %415 = vector.load %arg8[%c0_194, %c2_195, %414, %c0_196] : memref<1x4x8x128xf32, #tpu.memory_space<vmem>>, vector<1x1x8x128xf32>
    %416 = vector.shape_cast %415 : vector<1x1x8x128xf32> to vector<8x128xf32>
    %417 = vector.shape_cast %413 : vector<8x128xf32> to vector<1x1x8x128xf32>
    tpu.vector_store %arg8[%c0_194, %c2_195, %414, %c0_196], %417 {strides = array<i32>} : memref<1x4x8x128xf32, #tpu.memory_space<vmem>>, vector<1x1x8x128xf32>,
    %418 = vector.broadcast %43 : f32 to vector<8x128xf32>
    %419 = arith.mulf %129, %418 : vector<8x128xf32>
    %420 = vector.broadcast %47 : f32 to vector<8x128xf32>
    %421 = arith.mulf %153, %420 : vector<8x128xf32>
    %422 = arith.addf %419, %421 : vector<8x128xf32>
    %423 = vector.broadcast %51 : f32 to vector<8x128xf32>
    %424 = arith.mulf %177, %423 : vector<8x128xf32>
    %425 = arith.addf %422, %424 : vector<8x128xf32>
    %426 = vector.broadcast %55 : f32 to vector<8x128xf32>
    %427 = arith.mulf %201, %426 : vector<8x128xf32>
    %428 = arith.addf %425, %427 : vector<8x128xf32>
    %429 = vector.broadcast %59 : f32 to vector<8x128xf32>
    %430 = arith.mulf %225, %429 : vector<8x128xf32>
    %431 = arith.addf %428, %430 : vector<8x128xf32>
    %432 = vector.broadcast %63 : f32 to vector<8x128xf32>
    %433 = arith.mulf %249, %432 : vector<8x128xf32>
    %434 = arith.addf %431, %433 : vector<8x128xf32>
    %435 = vector.broadcast %67 : f32 to vector<8x128xf32>
    %436 = arith.mulf %273, %435 : vector<8x128xf32>
    %437 = arith.addf %434, %436 : vector<8x128xf32>
    %438 = vector.broadcast %71 : f32 to vector<8x128xf32>
    %439 = arith.mulf %297, %438 : vector<8x128xf32>
    %440 = arith.addf %437, %439 : vector<8x128xf32>
    %441 = vector.broadcast %75 : f32 to vector<8x128xf32>
    %442 = arith.addf %440, %441 : vector<8x128xf32>
    %cst_197 = arith.constant 2.000000e+01 : f32
    %443 = vector.broadcast %cst_197 : f32 to vector<8x128xf32>
    %444 = arith.minimumf %442, %443 : vector<8x128xf32>
    %445 = math.exp %444 : vector<8x128xf32>
    %cst_198 = arith.constant 2.000000e+00 : f32
    %446 = vector.broadcast %cst_198 : f32 to vector<8x128xf32>
    %447 = arith.addf %445, %446 : vector<8x128xf32>
    %448 = arith.mulf %445, %447 : vector<8x128xf32>
    %449 = arith.mulf %442, %448 : vector<8x128xf32>
    %cst_199 = arith.constant 2.000000e+00 : f32
    %450 = vector.broadcast %cst_199 : f32 to vector<8x128xf32>
    %451 = arith.addf %448, %450 : vector<8x128xf32>
    %452 = tpu.reciprocal %451 {approx = true} : vector<8x128xf32> -> vector<8x128xf32>
    %453 = arith.mulf %449, %452 : vector<8x128xf32>
    %c0_200 = arith.constant 0 : index
    %c3_201 = arith.constant 3 : index
    %454 = arith.index_cast %77 : i32 to index
    %c0_202 = arith.constant 0 : index
    %455 = vector.load %arg8[%c0_200, %c3_201, %454, %c0_202] : memref<1x4x8x128xf32, #tpu.memory_space<vmem>>, vector<1x1x8x128xf32>
    %456 = vector.shape_cast %455 : vector<1x1x8x128xf32> to vector<8x128xf32>
    %457 = vector.shape_cast %453 : vector<8x128xf32> to vector<1x1x8x128xf32>
    tpu.vector_store %arg8[%c0_200, %c3_201, %454, %c0_202], %457 {strides = array<i32>} : memref<1x4x8x128xf32, #tpu.memory_space<vmem>>, vector<1x1x8x128xf32>,
    %c1_i32 = arith.constant 1 : i32
    return
  }
  func.func @transform_0(%arg0: i32, %arg1: i32) -> (i32, i32, i32, i32) {
    %c0_i32 = arith.constant 0 : i32
    %c0_i32_0 = arith.constant 0 : i32
    %c0_i32_1 = arith.constant 0 : i32
    return %arg0, %c0_i32, %arg1, %c0_i32_0 : i32, i32, i32, i32
  }
  func.func @transform_1(%arg0: i32, %arg1: i32) -> (i32, i32, i32, i32) {
    %c0_i32 = arith.constant 0 : i32
    %c0_i32_0 = arith.constant 0 : i32
    %c0_i32_1 = arith.constant 0 : i32
    return %arg0, %c0_i32, %arg1, %c0_i32_0 : i32, i32, i32, i32
  }
  func.func @transform_2(%arg0: i32, %arg1: i32) -> (i32, i32) {
    %c0_i32 = arith.constant 0 : i32
    %c0_i32_0 = arith.constant 0 : i32
    %c0_i32_1 = arith.constant 0 : i32
    return %c0_i32, %c0_i32_0 : i32, i32
  }
  func.func @transform_3(%arg0: i32, %arg1: i32) -> i32 {
    %c0_i32 = arith.constant 0 : i32
    %c0_i32_0 = arith.constant 0 : i32
    return %c0_i32 : i32
  }
  func.func @transform_4(%arg0: i32, %arg1: i32) -> (i32, i32) {
    %c0_i32 = arith.constant 0 : i32
    %c0_i32_0 = arith.constant 0 : i32
    %c0_i32_1 = arith.constant 0 : i32
    return %c0_i32, %c0_i32_0 : i32, i32
  }
  func.func @transform_5(%arg0: i32, %arg1: i32) -> i32 {
    %c0_i32 = arith.constant 0 : i32
    %c0_i32_0 = arith.constant 0 : i32
    return %c0_i32 : i32
  }
  func.func @transform_6(%arg0: i32, %arg1: i32) -> (i32, i32, i32, i32) {
    %c0_i32 = arith.constant 0 : i32
    %c0_i32_0 = arith.constant 0 : i32
    %c0_i32_1 = arith.constant 0 : i32
    return %arg0, %c0_i32, %arg1, %c0_i32_0 : i32, i32, i32, i32
  }
}

</mosaic_0001>

<bundles_post_ra>
// kernel: mediator_forward.1
= control target key start
LH: loop header
LB: loop body
LE: loop exit
PB: predicated region body
PF: predicated region fallthrough
CT: control target
= control target key end

     0   :  { %s1715_s0 = inlined_call_operand.vmem [shape: f32[2,4,8,128], index: 0, kind: input, shape index: {}]   ;;  %s1716_s1 = inlined_call_operand.vmem [shape: f32[2,4,8,128], index: 1, kind: input, shape index: {}]   ;;  %s1717_s2 = inlined_call_operand.vmem [shape: f32[4,8], index: 2, kind: input, shape index: {}]   ;;  %s1718_s3 = inlined_call_operand.vmem [shape: f32[8], index: 3, kind: input, shape index: {}]   ;;  %s1719_s4 = inlined_call_operand.vmem [shape: f32[8,4], index: 4, kind: input, shape index: {}]   ;;  %s1720_s5 = inlined_call_operand.vmem [shape: f32[4], index: 5, kind: input, shape index: {}]   ;;  %s1721_s6 = inlined_call_operand.vmem [shape: f32[2,4,8,128], index: 6, kind: output, shape index: {}]  }
   0x1   :  { %1725 = sst [smem:[#allocation12_spill]] %s1715_s0 }
   0x2   :  { %1726 = sst [smem:[#allocation13_spill]] %s1716_s1 }
   0x3   :  { %11 = vsyncpa [#allocation3], 0 }
   0x4   :  { %12 = vsyncpa [#allocation5], 0 }
   0x5   :  { %13 = vsyncpa [#allocation8], 0  ;;  %s1287_s21 = smov 0   ;;  %s1289_s22 = smov 0  }
   0x6   :  { %s1291_s23 = smov 0  }
   0x7 LB: > { %s228_s26 = sshll.u32 %s1718_s3, 4  ;;  %s934_s27 = sadd.s32 4294967295, %s1246_s23   ;;  %s1246_s23 = sphi %s1291_s23, %s19_s23   ;;  %s1242_s22 = sphi %s1289_s22, %s1736_s22   ;;  %s1238_s21 = sphi %s1287_s21, %s1735_s21   ;;  %s229_s26 = int_to_ptr.vmem [resolvable:$true] %s228_s26 }
   0x8   : > { %p936_p0 = scmp.ge.s32.totalorder %s1246_s23, 1  ;;  %p204_p1 = scmp.lt.s32.totalorder %s1246_s23, 3 }
   0x9   : > { %p1308_p2 = scmp.eq.s32.totalorder %s934_s27, 0  ;;  %s31_s30 = sadd.s32 1, %s1242_s22 }
   0xa   : > { %p1312_p3 = pnand %p936_p0, %p204_p1  ;;  %s217_s9 = sshll.u32 %s1717_s2, 4  ;;  %s218_s9 = int_to_ptr.vmem [resolvable:$true] %s217_s9 }
   0xb   : > { %s1727_s28 = scalar_select %p1308_p2, 1, 0 }
   0xc   : > { %s1728_s29 = scalar_select %p1312_p3, 1, 0 }
   0xd   : > { %p1055_p4 = pneg %p1312_p3  ;;  %p1328_p6 = scmp.ge.s32.totalorder %s31_s30, 2 }
   0xe   : > { %s239_s14 = sshll.u32 %s1719_s4, 4  ;;  %s1152_s15 = scalar_lea.vmem %s229_s26, 16  ;;  %s240_s14 = int_to_ptr.vmem [resolvable:$true] %s239_s14 }
   0xf   : > { %p1324_p5 = pnand %p1308_p2, %p1055_p4  ;;  %p1153_p7 = scmp.ne.s32.totalorder %s229_s26, %s1152_s15 }
  0x10   : > { %p1160_p11 = scmp.lt.s32.totalorder %s229_s26, %s229_s26  ;;  %p1161_p12 = scmp.lt.s32.totalorder %s1152_s15, %s1152_s15 }
  0x11   : > { %p1154_p8 = pneg %p1324_p5 }
  0x12   : > { %p1162_p13 = por %p1161_p12, %p1160_p11 }
  0x13   : > { %p1155_p9 = pnand %p1154_p8, %p1153_p7 }
  0x15   : > { %p1156_p10 = pneg %p1155_p9 }
  0x17   : > { %p1163_p0 = pnand %p1162_p13, %p1156_p10 }
  0x19   : > { %1166 = shalt.err (!%p1163_p0)
}
  0x1a   : > { %s1248_s16 = smov [#allocation4]   ;;  %s1738_s30 = smov (%p1328_p6, %s31_s30), 0 }
  0x1b   : > { %1061 = dma.vmem_to_smem (!%p1324_p5), %s229_s26, 16, %s1248_s16, [#allocation5]  }
  0x1c   : > { %s1167_s17 = scalar_lea.vmem %s218_s9, 64  ;;  %p1175_p9 = scmp.lt.s32.totalorder %s218_s9, %s218_s9 }
  0x1d   : > { %p1168_p1 = scmp.ne.s32.totalorder %s218_s9, %s1167_s17  ;;  %p1176_p2 = scmp.lt.s32.totalorder %s1167_s17, %s1167_s17 }
  0x1f   : > { %p1170_p4 = pnand %p1168_p1, %p1154_p8  ;;  %p1177_p11 = por %p1176_p2, %p1175_p9 }
  0x21   : > { %p1171_p7 = pneg %p1170_p4 }
  0x23   : > { %p1178_p10 = pnand %p1177_p11, %p1171_p7 }
  0x25   : > { %1181 = shalt.err (!%p1178_p10)
}
  0x26   : > { %s1249_s18 = smov [#allocation2]   ;;  %s1182_s19 = scalar_lea.vmem %s240_s14, 128 }
  0x27   : > { %1058 = dma.vmem_to_smem (!%p1324_p5), %s218_s9, 64, %s1249_s18, [#allocation3]  }
  0x28   : > { %p1183_p6 = scmp.ne.s32.totalorder %s240_s14, %s1182_s19  ;;  %p1190_p0 = scmp.lt.s32.totalorder %s240_s14, %s240_s14 }
  0x29   : > { %p1191_p1 = scmp.lt.s32.totalorder %s1182_s19, %s1182_s19 }
  0x2a   : > { %p1185_p12 = pnand %p1183_p6, %p1154_p8 }
  0x2b   : > { %p1192_p4 = por %p1191_p1, %p1190_p0 }
  0x2c   : > { %p1186_p13 = pneg %p1185_p12 }
  0x2e   : > { %p1193_p3 = pnand %p1192_p4, %p1186_p13 }
  0x30   : > { %1196 = shalt.err (!%p1193_p3)
}
  0x31   : > { %s1250_s20 = smov [#allocation6]   ;;  %s250_s26 = sshll.u32 %s1720_s5, 4  ;;  %s251_s26 = int_to_ptr.vmem [resolvable:$true] %s250_s26 }
  0x32   : > { %1064 = dma.vmem_to_smem (!%p1324_p5), %s240_s14, 128, %s1250_s20, [#allocation5]  }
  0x33   : > { %s1197_s27 = scalar_lea.vmem %s251_s26, 16  ;;  %p1205_p11 = scmp.lt.s32.totalorder %s251_s26, %s251_s26 }
  0x34   : > { %p1198_p2 = scmp.ne.s32.totalorder %s251_s26, %s1197_s27  ;;  %p1206_p10 = scmp.lt.s32.totalorder %s1197_s27, %s1197_s27 }
  0x36   : > { %p1200_p7 = pnand %p1198_p2, %p1154_p8  ;;  %p1207_p6 = por %p1206_p10, %p1205_p11 }
  0x38   : > { %p1201_p9 = pneg %p1200_p7 }
  0x3a   : > { %p1208_p3 = pnand %p1207_p6, %p1201_p9 }
  0x3c   : > { %1211 = shalt.err (!%p1208_p3)
}
  0x3d   : > { %s1251_s7 = smov [#allocation7]   ;;  %p1731_p12 = scmp.ne.s32.totalorder %s1728_s29, 0 }
  0x3e   : > { %1067 = dma.vmem_to_smem (!%p1324_p5), %s251_s26, 16, %s1251_s7, [#allocation8]  }
  0x3f   : > { %285 = sbr.rel (%p1731_p12) target bundleno = 205 (0xcd), region = 44  ;;  %p1732_p13 = scmp.ne.s32.totalorder (!%p1731_p12), %s1727_s28, 0 }
  0x46   : > { %1225 = dma.done.wait (%p1732_p13), [#allocation3], 64  }
  0x47   : > { %1227 = vsyncadd (%p1732_p13), [#allocation3], 4294967232 }
  0x48   : > { %1229 = dma.done.wait (%p1732_p13), [#allocation5], 144  }
  0x49   : > { %1231 = vsyncadd (%p1732_p13), [#allocation5], 4294967152 }
  0x4a   : > { %1233 = dma.done.wait (%p1732_p13), [#allocation8], 16  }
  0x4b   : > { %1235 = vsyncadd (%p1732_p13), [#allocation8], 4294967280 }
  0x4c   : > { %303 = sfence }
  0x4d   : > { %p342_p5 = scmp.lt.s32.totalorder %s1238_s21, 1  ;;  %s1379_s29 = sld [smem:[#allocation2]] }
  0x4e   : > { %s1381_s8 = sld [smem:[#allocation2 + $0x1]]  ;;  %s1383_s9 = sld [smem:[#allocation2 + $0x2]] }
  0x4f   : > { %s1740_s21 = smov (!%p342_p5, %s1238_s21), 1  ;;  %s1386_s10 = sld [smem:[#allocation2 + $0x3]] }
  0x50   : > { %s1388_s11 = sld [smem:[#allocation2 + $0x4]]  ;;  %s1390_s12 = sshll.u32 %s1740_s21, 5 }
  0x51   : > { %s1392_s28 = sld [smem:[#allocation2 + $0x5]]  ;;  %s1733_s0 = sld [smem:[#allocation12_spill]] }
  0x52   : > { %s1734_s1 = sld [smem:[#allocation13_spill]]  ;;  %s1402_s19 = sld [smem:[#allocation2 + $0x6]] }
  0x53   : > { %s1404_s21 = sld [smem:[#allocation2 + $0x7]]  ;;  %s1406_s20 = sld [smem:[#allocation2 + $0x80]]  ;;  %v463_v5 = vstv %s1379_s29 }
  0x54   : > { %s1409_s24 = sld [smem:[#allocation2 + $0x81]]  ;;  %s1411_s25 = sld [smem:[#allocation2 + $0x82]]  ;;  %v485_v8 = vstv %s1381_s8  ;;  %v507_v9 = vstv %s1383_s9 }
  0x55   : > { %s1415_s26 = sld [smem:[#allocation2 + $0x83]]  ;;  %s1417_s27 = sld [smem:[#allocation2 + $0x84]]  ;;  %v529_v13 = vstv %s1386_s10 }
  0x56   : > { %s1419_s7 = sld [smem:[#allocation2 + $0x85]]  ;;  %v551_v14 = vstv %s1388_s11  ;;  %s1426_s29 = sld [smem:[#allocation2 + $0x100]] }
  0x57   : > { %s349_s15 = scalar_lea.vmem %s1733_s0, %s1390_s12  ;;  %v573_v15 = vstv %s1392_s28  ;;  %s1430_s8 = sld [smem:[#allocation2 + $0x101]] }
  0x58   : > { %s357_s18 = scalar_lea.vmem %s1734_s1, %s1390_s12  ;;  %v443_v1 = vld [vmem:[%s349_s15] sm:$0xff]  ;;  %v1026_v4 = vld [vmem:[%s349_s15 + $0x8] sm:$0xff]  ;;  %v1028_v7 = vld [vmem:[%s349_s15 + $0x10] sm:$0xff]  ;;  %s1432_s9 = sld [smem:[#allocation2 + $0x102]]  ;;  %v595_v23 = vstv %s1402_s19 }
  0x59   : > { %v442_v0 = vld [vmem:[%s357_s18] sm:$0xff]  ;;  %v1025_v3 = vld [vmem:[%s357_s18 + $0x8] sm:$0xff]  ;;  %v1027_v6 = vld [vmem:[%s357_s18 + $0x10] sm:$0xff]  ;;  %s1437_s10 = sld [smem:[#allocation2 + $0x103]]  ;;  %s1439_s11 = sld [smem:[#allocation2 + $0x104]]  ;;  %v465_v24 = vstv %s1406_s20 }
  0x5a   : > { %v444_v2 = vsub.f32 %v442_v0, %v443_v1  ;;  %v1029_v10 = vld [vmem:[%s357_s18 + $0x18] sm:$0xff]  ;;  %v1421_v12 = vsub.f32 %v1025_v3, %v1026_v4  ;;  %v1428_v16 = vsub.f32 %v1027_v6, %v1028_v7  ;;  %v617_v27 = vstv %s1404_s21  ;;  %s1450_s28 = sld [smem:[#allocation2 + $0x105]]  ;;  %s1452_s13 = sld [smem:[#allocation2 + $0x180]] }
  0x5b   : > { %v1030_v11 = vld [vmem:[%s349_s15 + $0x18] sm:$0xff]  ;;  %v487_v29 = vstv %s1409_s24  ;;  %v509_v30 = vstv %s1411_s25  ;;  %v531_v34 = vstv %s1415_s26  ;;  %s1458_s14 = sld [smem:[#allocation2 + $0x181]]  ;;  %s1460_s15 = sld [smem:[#allocation2 + $0x182]] }
  0x5c   : > { %v464_v17 = vmul.f32 %v463_v5, %v444_v2  ;;  %v486_v18 = vmul.f32 %v485_v8, %v444_v2  ;;  %v508_v19 = vmul.f32 %v507_v9, %v444_v2  ;;  %v1434_v20 = vsub.f32 %v1029_v10, %v1030_v11  ;;  %s1465_s16 = sld [smem:[#allocation2 + $0x183]]  ;;  %s1467_s17 = sld [smem:[#allocation2 + $0x184]] }
  0x5d   : > { %v530_v21 = vmul.f32 %v529_v13, %v444_v2  ;;  %v552_v22 = vmul.f32 %v551_v14, %v444_v2  ;;  %v574_v25 = vmul.f32 %v573_v15, %v444_v2  ;;  %v1442_v26 = vmul.f32 %v595_v23, %v444_v2  ;;  %s1474_s18 = sld [smem:[#allocation2 + $0x185]]  ;;  %s1476_s19 = sld [smem:[#allocation4]] }
  0x5e   : > { %v466_v28 = vmul.f32 %v465_v24, %v1421_v12  ;;  %v1448_v31 = vmul.f32 %v617_v27, %v444_v2  ;;  %v488_v32 = vmul.f32 %v487_v29, %v1421_v12  ;;  %v510_v33 = vmul.f32 %v509_v30, %v1421_v12  ;;  %s1481_s21 = sld [smem:[#allocation4 + $0x1]]  ;;  %s1483_s20 = sld [smem:[#allocation4 + $0x2]] }
  0x5f   : > { %v553_v35 = vstv %s1417_s27  ;;  %v532_v37 = vmul.f32 %v531_v34, %v1421_v12  ;;  %v575_v39 = vstv %s1419_s7  ;;  %v468_v40 = vstv %s1426_s29  ;;  %s1487_s24 = sld [smem:[#allocation4 + $0x3]]  ;;  %s1489_s25 = sld [smem:[#allocation4 + $0x4]] }
  0x60   : > { %v467_v36 = vadd.f32 %v466_v28, %v464_v17  ;;  %v554_v38 = vmul.f32 %v553_v35, %v1421_v12  ;;  %v489_v41 = vadd.f32 %v488_v32, %v486_v18  ;;  %v511_v42 = vadd.f32 %v510_v33, %v508_v19  ;;  %s1493_s26 = sld [smem:[#allocation2 + $0x86]]  ;;  %s1495_s27 = sld [smem:[#allocation4 + $0x5]] }
  0x61   : > { %v576_v43 = vmul.f32 %v575_v39, %v1421_v12  ;;  %v469_v44 = vmul.f32 %v468_v40, %v1428_v16  ;;  %v490_v45 = vstv %s1430_s8  ;;  %v512_v46 = vstv %s1432_s9  ;;  %s1500_s7 = sld [smem:[#allocation2 + $0x106]]  ;;  %s1516_s8 = sld [smem:[#allocation2 + $0x87]] }
  0x62   : > { %v533_v47 = vadd.f32 %v532_v37, %v530_v21  ;;  %v491_v48 = vmul.f32 %v490_v45, %v1428_v16  ;;  %v513_v49 = vmul.f32 %v512_v46, %v1428_v16  ;;  %v534_v50 = vstv %s1437_s10  ;;  %s1502_s29 = sld [smem:[#allocation2 + $0x186]]  ;;  %s1518_s9 = sld [smem:[#allocation2 + $0x107]] }
  0x63   : > { %v555_v51 = vadd.f32 %v554_v38, %v552_v22  ;;  %v470_v52 = vadd.f32 %v469_v44, %v467_v36  ;;  %v535_v53 = vmul.f32 %v534_v50, %v1428_v16  ;;  %v556_v54 = vstv %s1439_s11  ;;  %s1530_s10 = sld [smem:[#allocation2 + $0x187]]  ;;  %s1532_s11 = sld [smem:[#allocation4 + $0x6]] }
  0x64   : > { %v577_v55 = vadd.f32 %v576_v43, %v574_v25  ;;  %v471_v56 = vstv %s1452_s13  ;;  %v492_v57 = vadd.f32 %v491_v48, %v489_v41  ;;  %v514_v58 = vadd.f32 %v513_v49, %v511_v42  ;;  %s1565_s13 = sld [smem:[#allocation6]]  ;;  %s1613_s0 = sld [smem:[#allocation6 + $0x83]] }
  0x65   : > { %v557_v59 = vmul.f32 %v556_v54, %v1428_v16  ;;  %v472_v60 = vmul.f32 %v471_v56, %v1434_v20  ;;  %v493_v61 = vstv %s1458_s14  ;;  %v515_v62 = vstv %s1460_s15  ;;  %s1568_s14 = sld [smem:[#allocation6 + $0x1]]  ;;  %s1570_s15 = sld [smem:[#allocation6 + $0x80]] }
  0x66   : > { %v536_v63 = vadd.f32 %v535_v53, %v533_v47  ;;  %v494_v0 = vmul.f32 %v493_v61, %v1434_v20  ;;  %v516_v1 = vmul.f32 %v515_v62, %v1434_v20  ;;  %v537_v2 = vstv %s1465_s16  ;;  %s1573_s16 = sld [smem:[#allocation6 + $0x100]]  ;;  %s1618_s1 = sld [smem:[#allocation6 + $0x183]] }
  0x67   : > { %v558_v3 = vadd.f32 %v557_v59, %v555_v51  ;;  %v473_v4 = vadd.f32 %v472_v60, %v470_v52  ;;  %v538_v5 = vmul.f32 %v537_v2, %v1434_v20  ;;  %v559_v6 = vstv %s1467_s17  ;;  %s1575_s17 = sld [smem:[#allocation6 + $0x180]] }
  0x68   : > { %v578_v7 = vstv %s1450_s28  ;;  %v474_v8 = vstv %s1476_s19  ;;  %v495_v9 = vadd.f32 %v494_v0, %v492_v57  ;;  %v517_v10 = vadd.f32 %v516_v1, %v514_v58  ;;  %s1545_s28 = sld [smem:[#allocation4 + $0x7]]  ;;  %s1581_s19 = sld [smem:[#allocation6 + $0x280]] }
  0x69   : > { %v560_v11 = vmul.f32 %v559_v6, %v1434_v20  ;;  %v1512_v13 = vadd.f32 %v474_v8, %v473_v4  ;;  %v496_v14 = vstv %s1481_s21  ;;  %v518_v15 = vstv %s1483_s20  ;;  %s1583_s21 = sld [smem:[#allocation6 + $0x300]]  ;;  %s1585_s20 = sld [smem:[#allocation6 + $0x81]] }
  0x6a   : > { %v539_v17 = vadd.f32 %v538_v5, %v536_v63  ;;  %v1520_v18 = vadd.f32 %v496_v14, %v495_v9  ;;  %v1522_v19 = vadd.f32 %v518_v15, %v517_v10  ;;  %v540_v21 = vstv %s1487_s24  ;;  %s1587_s24 = sld [smem:[#allocation6 + $0x101]] }
  0x6b   : > { %v561_v22 = vadd.f32 %v560_v11, %v558_v3  ;;  %v476_v23 = vmin.f32 %v1512_v13, 20.0  ;;  %v562_v25 = vstv %s1489_s25  ;;  %v579_v27 = vmul.f32 %v578_v7, %v1428_v16  ;;  %s1590_s25 = sld [smem:[#allocation6 + $0x181]] }
  0x6c   : > { %v1526_v24 = vadd.f32 %v540_v21, %v539_v17  ;;  %v498_v28 = vmin.f32 %v1520_v18, 20.0  ;;  %v520_v29 = vmin.f32 %v1522_v19, 20.0  ;;  %v581_v32 = vstv %s1474_s18  ;;  %s1577_s18 = sld [smem:[#allocation6 + $0x200]] }
  0x6d   : > { %v1536_v30 = vadd.f32 %v562_v25, %v561_v22  ;;  %v477_v33 = vmul.f32 1.442695, %v476_v23  ;;  %v580_v34 = vadd.f32 %v579_v27, %v577_v55  ;;  %v582_v35 = vmul.f32 %v581_v32, %v1434_v20 }
  0x6e   : > { %v584_v36 = vstv %s1495_s27  ;;  %v499_v37 = vmul.f32 1.442695, %v498_v28  ;;  %v597_v38 = vstv %s1493_s26  ;;  %v600_v39 = vstv %s1500_s7  ;;  %s1592_s26 = sld [smem:[#allocation6 + $0x201]]  ;;  %s1596_s7 = sld [smem:[#allocation6 + $0x2]] }
  0x6f   : > { %v603_v40 = vstv %s1502_s29  ;;  %1104 = vpow2.f32 %v477_v33  ;;  %v521_v41 = vmul.f32 1.442695, %v520_v29  ;;  %v583_v42 = vadd.f32 %v582_v35, %v580_v34  ;;  %s1594_s27 = sld [smem:[#allocation6 + $0x281]]  ;;  %s1598_s29 = sld [smem:[#allocation6 + $0x82]] }
  0x70   : > { %v598_v43 = vmul.f32 %v597_v38, %v1421_v12  ;;  %1106 = vpow2.f32 %v499_v37  ;;  %v542_v44 = vmin.f32 %v1526_v24, 20.0  ;;  %v564_v45 = vmin.f32 %v1536_v30, 20.0 }
  0x71   : > { %v601_v46 = vmul.f32 %v600_v39, %v1428_v16  ;;  %1108 = vpow2.f32 %v521_v41  ;;  %v1550_v47 = vadd.f32 %v584_v36, %v583_v42  ;;  %v604_v49 = vmul.f32 %v603_v40, %v1434_v20 }
  0x72   : > { %v599_v48 = vadd.f32 %v598_v43, %v1442_v26  ;;  %v543_v50 = vmul.f32 1.442695, %v542_v44  ;;  %v619_v51 = vstv %s1516_s8  ;;  %v622_v52 = vstv %s1518_s9  ;;  %s1600_s8 = sld [smem:[#allocation6 + $0x102]] }
  0x73   : > { %v565_v53 = vmul.f32 1.442695, %v564_v45  ;;  %v620_v55 = vmul.f32 %v619_v51, %v1421_v12  ;;  %v623_v56 = vmul.f32 %v622_v52, %v1428_v16  ;;  %v586_v57 = vmin.f32 %v1550_v47, 20.0  ;;  %s1602_s9 = sld [smem:[#allocation6 + $0x182]] }
  0x74   : > { %v602_v54 = vadd.f32 %v601_v46, %v599_v48  ;;  %1110 = vpow2.f32 %v543_v50  ;;  %v606_v58 = vstv %s1532_s11  ;;  %v625_v59 = vstv %s1530_s10  ;;  %s1605_s10 = sld [smem:[#allocation6 + $0x202]] }
  0x75   : > { %1112 = vpow2.f32 %v565_v53  ;;  %v621_v26 = vadd.f32 %v620_v55, %v1448_v31  ;;  %v626_v61 = vmul.f32 %v625_v59, %v1434_v20  ;;  %v587_v62 = vmul.f32 1.442695, %v586_v57  ;;  %s1607_s11 = sld [smem:[#allocation6 + $0x282]] }
  0x76   : > { %v605_v60 = vadd.f32 %v604_v49, %v602_v54  ;;  %v628_v12 = vstv %s1545_s28  ;;  %v639_v29 = vstv %s1565_s13  ;;  %v641_v34 = vstv %s1570_s15  ;;  %s1611_s28 = sld [smem:[#allocation6 + $0x3]] }
  0x77   : > { %v624_v0 = vadd.f32 %v623_v56, %v621_v26  ;;  %1114 = vpow2.f32 %v587_v62  ;;  %v644_v35 = vstv %s1573_s16  ;;  %v647_v38 = vstv %s1575_s17  ;;  %s1616_s13 = sld [smem:[#allocation6 + $0x103]]  ;;  %s1666_s17 = sld [smem:[#allocation6 + $0x381]] }
  0x78   : > { %v1563_v63 = vadd.f32 %v606_v58, %v605_v60  ;;  %v650_v40 = vstv %s1577_s18  ;;  %v653_v41 = vstv %s1581_s19  ;;  %v656_v42 = vstv %s1583_s21  ;;  %s1647_s15 = sld [smem:[#allocation6 + $0x283]]  ;;  %s1668_s18 = sld [smem:[#allocation6 + $0x382]] }
  0x79   : > { %v1105_v16 = vpop.eup %1104  ;;  %v627_v2 = vadd.f32 %v626_v61, %v624_v0  ;;  %v674_v44 = vstv %s1568_s14  ;;  %v676_v45 = vstv %s1585_s20  ;;  %v679_v46 = vstv %s1587_s24  ;;  %s1645_s14 = sld [smem:[#allocation6 + $0x203]]  ;;  %s1664_s20 = sld [smem:[#allocation6 + $0x380]] }
  0x7a   : > { %v608_v1 = vmin.f32 %v1563_v63, 20.0  ;;  %v1107_v3 = vpop.eup %1106  ;;  %v479_v20 = vadd.f32 2.0, %v1105_v16  ;;  %v682_v48 = vstv %s1590_s25  ;;  %v685_v49 = vstv %s1592_s26  ;;  %s1653_s16 = sld [smem:[#allocation6 + $0x303]]  ;;  %s1682_s25 = sld [smem:[#allocation7]] }
  0x7b   : > { %v1109_v31 = vpop.eup %1108  ;;  %v501_v4 = vadd.f32 2.0, %v1107_v3  ;;  %v1579_v6 = vadd.f32 %v628_v12, %v627_v2  ;;  %v688_v54 = vstv %s1594_s27  ;;  %v710_v57 = vstv %s1596_s7  ;;  %s1670_s24 = sld [smem:[#allocation6 + $0x383]]  ;;  %s1685_s19 = sld [smem:[#allocation7 + $0x1]] }
  0x7c   : > { %v609_v5 = vmul.f32 1.442695, %v608_v1  ;;  %v480_v7 = vmul.f32 %v1105_v16, %v479_v20  ;;  %v523_v8 = vadd.f32 2.0, %v1109_v31  ;;  %v712_v58 = vstv %s1598_s29  ;;  %s1687_s26 = sld [smem:[#allocation7 + $0x2]]  ;;  %s1690_s27 = sld [smem:[#allocation7 + $0x3]] }
  0x7d   : > { %v502_v9 = vmul.f32 %v1107_v3, %v501_v4  ;;  %v630_v10 = vmin.f32 %v1579_v6, 20.0  ;;  %v715_v60 = vstv %s1600_s8  ;;  %v718_v26 = vstv %s1602_s9  ;;  %s365_s29 = scalar_lea.vmem %s1721_s6, %s1390_s12 }
  0x7e   : > { %1116 = vpow2.f32 %v609_v5  ;;  %v1111_v11 = vpop.eup %1110  ;;  %v482_v14 = vadd.f32 2.0, %v480_v7  ;;  %v524_v15 = vmul.f32 %v1109_v31, %v523_v8  ;;  %v481_v51 = vmul.f32 %v480_v7, %v1512_v13 }
  0x7f   : > { %v1113_v17 = vpop.eup %1112  ;;  %v504_v21 = vadd.f32 2.0, %v502_v9  ;;  %v545_v22 = vadd.f32 2.0, %v1111_v11  ;;  %v631_v23 = vmul.f32 1.442695, %v630_v10  ;;  %v503_v52 = vmul.f32 %v502_v9, %v1520_v18 }
  0x80   : > { %1118 = vrcp.f32 %v482_v14  ;;  %v526_v25 = vadd.f32 2.0, %v524_v15  ;;  %v567_v27 = vadd.f32 2.0, %v1113_v17  ;;  %v525_v55 = vmul.f32 %v524_v15, %v1522_v19 }
  0x81   : > { %1120 = vrcp.f32 %v504_v21  ;;  %v546_v28 = vmul.f32 %v1111_v11, %v545_v22  ;;  %v1115_v32 = vpop.eup %1114  ;;  %v721_v62 = vstv %s1605_s10  ;;  %v724_v0 = vstv %s1607_s11 }
  0x82   : > { %1122 = vrcp.f32 %v526_v25  ;;  %v568_v33 = vmul.f32 %v1113_v17, %v567_v27  ;;  %v589_v37 = vadd.f32 2.0, %v1115_v32  ;;  %v746_v1 = vstv %s1611_s28 }
  0x83   : > { %v548_v36 = vadd.f32 2.0, %v546_v28  ;;  %1124 = vpow2.f32 %v631_v23  ;;  %v547_v59 = vmul.f32 %v546_v28, %v1526_v24  ;;  %v748_v2 = vstv %s1613_s0  ;;  %s1649_s0 = sld [smem:[#allocation6 + $0x301]] }
  0x84   : > { %v570_v39 = vadd.f32 2.0, %v568_v33  ;;  %v590_v43 = vmul.f32 %v1115_v32, %v589_v37  ;;  %v569_v61 = vmul.f32 %v568_v33, %v1536_v30  ;;  %v751_v31 = vstv %s1616_s13 }
  0x85   : > { %1126 = vrcp.f32 %v548_v36  ;;  %v754_v4 = vstv %s1618_s1  ;;  %s1651_s1 = sld [smem:[#allocation6 + $0x302]] }
  0x86   : > { %1128 = vrcp.f32 %v570_v39  ;;  %v592_v53 = vadd.f32 2.0, %v590_v43  ;;  %v591_v16 = vmul.f32 %v590_v43, %v1550_v47 }
  0x88   : > { %v1117_v50 = vpop.eup %1116  ;;  %1130 = vrcp.f32 %v592_v53 }
  0x89   : > { %v611_v56 = vadd.f32 2.0, %v1117_v50 }
  0x8a   : > { %v1119_v13 = vpop.eup %1118 }
  0x8b   : > { %v612_v18 = vmul.f32 %v1117_v50, %v611_v56  ;;  %v1121_v12 = vpop.eup %1120  ;;  %v484_v19 = vmul.f32 %v1119_v13, %v481_v51 }
  0x8c   : > { %v1123_v3 = vpop.eup %1122  ;;  %v506_v20 = vmul.f32 %v1121_v12, %v503_v52 }
  0x8d   : > { %v614_v24 = vadd.f32 2.0, %v612_v18  ;;  %v1125_v5 = vpop.eup %1124  ;;  %v528_v7 = vmul.f32 %v1123_v3, %v525_v55  ;;  %v640_v8 = vmul.f32 %v639_v29, %v484_v19  ;;  %v675_v9 = vmul.f32 %v674_v44, %v484_v19 }
  0x8e   : > { %v711_v10 = vmul.f32 %v710_v57, %v484_v19  ;;  %v633_v30 = vadd.f32 2.0, %v1125_v5  ;;  %v642_v11 = vmul.f32 %v641_v34, %v506_v20  ;;  %v677_v14 = vmul.f32 %v676_v45, %v506_v20 }
  0x8f   : > { %1132 = vrcp.f32 %v614_v24  ;;  %v1127_v15 = vpop.eup %1126  ;;  %v645_v47 = vmul.f32 %v644_v35, %v528_v7  ;;  %v680_v17 = vmul.f32 %v679_v46, %v528_v7  ;;  %v713_v21 = vmul.f32 %v712_v58, %v506_v20 }
  0x90   : > { %v716_v22 = vmul.f32 %v715_v60, %v528_v7  ;;  %v1129_v23 = vpop.eup %1128  ;;  %v550_v25 = vmul.f32 %v1127_v15, %v547_v59  ;;  %v634_v27 = vmul.f32 %v1125_v5, %v633_v30  ;;  %v643_v28 = vadd.f32 %v642_v11, %v640_v8 }
  0x91   : > { %v678_v29 = vadd.f32 %v677_v14, %v675_v9  ;;  %v572_v32 = vmul.f32 %v1129_v23, %v569_v61  ;;  %v714_v33 = vadd.f32 %v713_v21, %v711_v10  ;;  %v747_v34 = vmul.f32 %v746_v1, %v484_v19 }
  0x92   : > { %v749_v35 = vmul.f32 %v748_v2, %v506_v20  ;;  %v613_v36 = vmul.f32 %v612_v18, %v1563_v63  ;;  %v636_v37 = vadd.f32 2.0, %v634_v27  ;;  %v646_v39 = vadd.f32 %v645_v47, %v643_v28  ;;  %v1131_v44 = vpop.eup %1130 }
  0x93   : > { %v648_v43 = vmul.f32 %v647_v38, %v550_v25  ;;  %v651_v45 = vmul.f32 %v650_v40, %v572_v32  ;;  %v681_v46 = vadd.f32 %v680_v17, %v678_v29  ;;  %v683_v50 = vmul.f32 %v682_v48, %v550_v25 }
  0x94   : > { %v686_v51 = vmul.f32 %v685_v49, %v572_v32  ;;  %v594_v52 = vmul.f32 %v1131_v44, %v591_v16  ;;  %1134 = vrcp.f32 %v636_v37  ;;  %v717_v63 = vadd.f32 %v716_v22, %v714_v33 }
  0x95   : > { %v649_v53 = vadd.f32 %v648_v43, %v646_v39  ;;  %v684_v38 = vadd.f32 %v683_v50, %v681_v46  ;;  %v719_v40 = vmul.f32 %v718_v26, %v550_v25  ;;  %v722_v55 = vmul.f32 %v721_v62, %v572_v32 }
  0x96   : > { %v750_v48 = vadd.f32 %v749_v35, %v747_v34  ;;  %v654_v56 = vmul.f32 %v653_v41, %v594_v52  ;;  %v689_v57 = vmul.f32 %v688_v54, %v594_v52  ;;  %v757_v58 = vstv %s1645_s14 }
  0x97   : > { %v652_v49 = vadd.f32 %v651_v45, %v649_v53  ;;  %v687_v59 = vadd.f32 %v686_v51, %v684_v38  ;;  %v720_v60 = vadd.f32 %v719_v40, %v717_v63  ;;  %v725_v13 = vmul.f32 %v724_v0, %v594_v52 }
  0x98   : > { %v752_v61 = vmul.f32 %v751_v31, %v528_v7  ;;  %v691_v18 = vstv %s1649_s0  ;;  %v727_v62 = vstv %s1651_s1  ;;  %v755_v12 = vmul.f32 %v754_v4, %v550_v25 }
  0x99   : > { %v1133_v26 = vpop.eup %1132  ;;  %v760_v19 = vstv %s1647_s15  ;;  %v723_v1 = vadd.f32 %v722_v55, %v720_v60  ;;  %v763_v54 = vstv %s1653_s16  ;;  %v635_v0 = vmul.f32 %v634_v27, %v1579_v6 }
  0x9a   : > { %v616_v16 = vmul.f32 %v1133_v26, %v613_v36  ;;  %v753_v41 = vadd.f32 %v752_v61, %v750_v48  ;;  %v655_v2 = vadd.f32 %v654_v56, %v652_v49  ;;  %v690_v3 = vadd.f32 %v689_v57, %v687_v59 }
  0x9b   : > { %v758_v20 = vmul.f32 %v757_v58, %v572_v32  ;;  %v726_v4 = vadd.f32 %v725_v13, %v723_v1  ;;  %v761_v8 = vmul.f32 %v760_v19, %v594_v52  ;;  %v659_v9 = vstv %s1664_s20 }
  0x9c   : > { %v657_v24 = vmul.f32 %v656_v42, %v616_v16  ;;  %v692_v31 = vmul.f32 %v691_v18, %v616_v16  ;;  %v728_v5 = vmul.f32 %v727_v62, %v616_v16  ;;  %v756_v7 = vadd.f32 %v755_v12, %v753_v41 }
  0x9d   : > { %v694_v10 = vstv %s1666_s17  ;;  %v730_v6 = vstv %s1668_s18  ;;  %v764_v14 = vmul.f32 %v763_v54, %v616_v16  ;;  %v766_v15 = vstv %s1670_s24 }
  0x9e   : > { %v1135_v30 = vpop.eup %1134  ;;  %v759_v11 = vadd.f32 %v758_v20, %v756_v7  ;;  %v658_v17 = vadd.f32 %v657_v24, %v655_v2  ;;  %v693_v21 = vadd.f32 %v692_v31, %v690_v3  ;;  %v729_v42 = vadd.f32 %v728_v5, %v726_v4 }
  0x9f   : > { %v638_v47 = vmul.f32 %v1135_v30, %v635_v0  ;;  %v662_v29 = vstv %s1682_s25  ;;  %v697_v32 = vstv %s1685_s19  ;;  %v733_v33 = vstv %s1687_s26 }
  0xa0   : > { %v762_v22 = vadd.f32 %v761_v8, %v759_v11  ;;  %v769_v39 = vstv %s1690_s27 }
  0xa1   : > { %v660_v23 = vmul.f32 %v659_v9, %v638_v47  ;;  %v695_v25 = vmul.f32 %v694_v10, %v638_v47  ;;  %v731_v27 = vmul.f32 %v730_v6, %v638_v47  ;;  %v767_v28 = vmul.f32 %v766_v15, %v638_v47 }
  0xa2   : > { %v765_v34 = vadd.f32 %v764_v14, %v762_v22 }
  0xa3   : > { %v661_v35 = vadd.f32 %v660_v23, %v658_v17  ;;  %v696_v36 = vadd.f32 %v695_v25, %v693_v21  ;;  %v732_v37 = vadd.f32 %v731_v27, %v729_v42 }
  0xa4   : > { %v768_v43 = vadd.f32 %v767_v28, %v765_v34 }
  0xa5   : > { %v663_v44 = vadd.f32 %v662_v29, %v661_v35  ;;  %v698_v45 = vadd.f32 %v697_v32, %v696_v36  ;;  %v734_v46 = vadd.f32 %v733_v33, %v732_v37 }
  0xa6   : > { %v770_v50 = vadd.f32 %v769_v39, %v768_v43 }
  0xa7   : > { %v664_v51 = vmin.f32 %v663_v44, 20.0  ;;  %v699_v52 = vmin.f32 %v698_v45, 20.0  ;;  %v735_v53 = vmin.f32 %v734_v46, 20.0 }
  0xa8   : > { %v771_v63 = vmin.f32 %v770_v50, 20.0 }
  0xa9   : > { %v665_v38 = vmul.f32 1.442695, %v664_v51  ;;  %v700_v40 = vmul.f32 1.442695, %v699_v52  ;;  %v736_v55 = vmul.f32 1.442695, %v735_v53 }
  0xaa   : > { %v772_v48 = vmul.f32 1.442695, %v771_v63 }
  0xab   : > { %1136 = vpow2.f32 %v665_v38 }
  0xac   : > { %1138 = vpow2.f32 %v700_v40 }
  0xad   : > { %1140 = vpow2.f32 %v736_v55 }
  0xae   : > { %1142 = vpow2.f32 %v772_v48 }
  0xb5   : > { %v1137_v49 = vpop.eup %1136 }
  0xb6   : > { %v1139_v56 = vpop.eup %1138  ;;  %v667_v57 = vadd.f32 2.0, %v1137_v49 }
  0xb7   : > { %v1141_v58 = vpop.eup %1140  ;;  %v702_v59 = vadd.f32 2.0, %v1139_v56 }
  0xb8   : > { %v1143_v60 = vpop.eup %1142  ;;  %v668_v13 = vmul.f32 %v1137_v49, %v667_v57  ;;  %v738_v61 = vadd.f32 2.0, %v1141_v58 }
  0xb9   : > { %v703_v26 = vmul.f32 %v1139_v56, %v702_v59  ;;  %v774_v18 = vadd.f32 2.0, %v1143_v60 }
  0xba   : > { %v670_v62 = vadd.f32 2.0, %v668_v13  ;;  %v739_v12 = vmul.f32 %v1141_v58, %v738_v61  ;;  %v669_v54 = vmul.f32 %v668_v13, %v663_v44 }
  0xbb   : > { %v705_v19 = vadd.f32 2.0, %v703_v26  ;;  %v775_v16 = vmul.f32 %v1143_v60, %v774_v18  ;;  %v704_v0 = vmul.f32 %v703_v26, %v698_v45 }
  0xbc   : > { %1144 = vrcp.f32 %v670_v62  ;;  %v741_v1 = vadd.f32 2.0, %v739_v12  ;;  %v740_v2 = vmul.f32 %v739_v12, %v734_v46 }
  0xbd   : > { %1146 = vrcp.f32 %v705_v19  ;;  %v777_v41 = vadd.f32 2.0, %v775_v16  ;;  %v776_v20 = vmul.f32 %v775_v16, %v770_v50 }
  0xbe   : > { %1148 = vrcp.f32 %v741_v1 }
  0xbf   : > { %1150 = vrcp.f32 %v777_v41 }
  0xc6   : > { %v1145_v3 = vpop.eup %1144 }
  0xc7   : > { %v1147_v24 = vpop.eup %1146  ;;  %v672_v31 = vmul.f32 %v1145_v3, %v669_v54 }
  0xc8   : > { %v1149_v4 = vpop.eup %1148  ;;  %v707_v5 = vmul.f32 %v1147_v24, %v704_v0 }
  0xc9   : > { %v1151_v7 = vpop.eup %1150  ;;  %673 = vst [vmem:[%s365_s29] sm:$0xff] %v672_v31  ;;  %v743_v8 = vmul.f32 %v1149_v4, %v740_v2 }
  0xca   : > { %1031 = vst [vmem:[%s365_s29 + $0x8] sm:$0xff] %v707_v5  ;;  %v779_v9 = vmul.f32 %v1151_v7, %v776_v20 }
  0xcb   : > { %1032 = vst [vmem:[%s365_s29 + $0x10] sm:$0xff] %v743_v8 }
  0xcc   : > { %1033 = vst [vmem:[%s365_s29 + $0x18] sm:$0xff] %v779_v9 }
  0xcd PF: > { %s19_s23 = sadd.s32 1, %s1246_s23   ;;  %s1735_s21 = smov %s1242_s22 }
  0xce   : > { %p16_p8 = scmp.ge.s32.totalorder %s19_s23, 4   ;;  %s1736_s22 = smov %s1738_s30 }
  0xd0   :  { %18 = sbr.rel (!%p16_p8) target bundleno = 7 (0x7), region = 103 }
  0xd7   :  { %809 = vsyncpa [#allocation3], 1 }
  0xd8   :  { %811 = vsyncpa [#allocation3 + $0x1], 1 }
  0xd9   :  { %812 = vsyncpa [#allocation5], 1 }
  0xda   :  { %813 = vsyncpa [#allocation8], 1 }

</bundles_post_ra>
